<compile_context>
chip_gen: v6e
topology: v6e:2x2x1
jax: 0.10.0
libtpu: 0.0.40
codegen_flags: <defaults>
</compile_context>

<pallas_src>
import functools

import jax
import jax.numpy as jnp
from jax.experimental import pallas as pl
from jax.experimental.pallas import tpu as pltpu


def _round_up(x, m=128):
    return ((x + m - 1) // m) * m


def decoder_rnn_kernel(x_ref, h0_ref, wih_ref, whh_ref, brz_ref, bin_ref, bhn_ref,
                       wout_ref, bout_ref, logp_ref, hout_ref, *, seq_len, hp):
    """Single-invocation kernel: full GRU recurrence + Linear/LogSoftmax head.

    Padded, lane-dense shapes (set up by the wrapper):
      x_ref   : (T, B, Ep)     relu applied in-kernel
      h0_ref  : (1, B, Hp)
      wih_ref : (Ep, 3*Hp)     gate-major columns [r | z | n], each Hp wide
      whh_ref : (Hp, 3*Hp)
      brz_ref : (1, 2*Hp)      b_ih[r,z] + b_hh[r,z]
      bin_ref : (1, Hp)        b_ih[n]
      bhn_ref : (1, Hp)        b_hh[n]
      wout_ref: (Hp, Vp)
      bout_ref: (1, Vp)        pad lanes = -1e30 so log-softmax ignores them
      logp_ref: (B, Vp)
      hout_ref: (1, B, Hp)
    """
    Hp = hp
    x_all = jnp.maximum(x_ref[...], 0.0)        # relu(embedding) over the whole slab
    wih = wih_ref[...]
    whh = whh_ref[...]
    b_rz = brz_ref[...]
    b_in = bin_ref[...]
    b_hn = bhn_ref[...]

    h = h0_ref[0]                               # (B, Hp), carried in vregs
    h1 = h
    # seq_len is a small static int: fully-unrolled recurrence.
    for t in range(seq_len):
        gi = jnp.dot(x_all[t], wih, preferred_element_type=jnp.float32)   # (B, 3Hp)
        gh = jnp.dot(h, whh, preferred_element_type=jnp.float32)          # (B, 3Hp)
        # r/z share one sigmoid over a lane-aligned (B, 2Hp) block.
        rz = jax.nn.sigmoid(gi[:, :2 * Hp] + gh[:, :2 * Hp] + b_rz)
        r = rz[:, :Hp]
        z = rz[:, Hp:]
        n = jnp.tanh(gi[:, 2 * Hp:] + b_in + r * (gh[:, 2 * Hp:] + b_hn))
        h = (1.0 - z) * n + z * h
        if t == 0:
            h1 = h                               # hidden after step 0 feeds the head

    hout_ref[0] = h                              # final hidden (1, B, Hp)

    # output[0] -> Linear -> LogSoftmax(dim=1), once, outside the recurrence.
    logits = jnp.dot(h1, wout_ref[...], preferred_element_type=jnp.float32) + bout_ref[...]
    m = jnp.max(logits, axis=1, keepdims=True)
    lse = m + jnp.log(jnp.sum(jnp.exp(logits - m), axis=1, keepdims=True))
    logp_ref[...] = logits - lse


def decoder_rnn_forward(token_ids, hidden, params):
    """token_ids: (T, B) int32, hidden: (1, B, H) f32 -> (logp (B, V), hidden (1, B, H))."""
    emb = params["embedding"]                    # (V, E)
    V, E = emb.shape
    T, B = token_ids.shape
    H = hidden.shape[-1]

    Ep, Hp, Vp = _round_up(E), _round_up(H), _round_up(V)

    # Embedding gather (glue) + lane padding to 128 multiples.
    x = jnp.take(emb, token_ids, axis=0)         # (T, B, E)
    x_p = jnp.pad(x, ((0, 0), (0, 0), (0, Ep - E)))
    h0_p = jnp.pad(hidden, ((0, 0), (0, 0), (0, Hp - H)))

    # Gate-major, lane-padded GRU weights: columns [r | z | n], each Hp wide.
    def gate_pad(w_t, in_dim, in_pad):           # w_t: (in_dim, 3H)
        blocks = []
        for g in range(3):
            blk = w_t[:, g * H:(g + 1) * H]
            blocks.append(jnp.pad(blk, ((0, in_pad - in_dim), (0, Hp - H))))
        return jnp.concatenate(blocks, axis=1)   # (in_pad, 3*Hp)

    wih_p = gate_pad(params["w_ih"].T, E, Ep)    # (Ep, 3Hp)
    whh_p = gate_pad(params["w_hh"].T, H, Hp)    # (Hp, 3Hp)

    b_ih, b_hh = params["b_ih"], params["b_hh"]
    b_r = jnp.pad(b_ih[:H] + b_hh[:H], (0, Hp - H))
    b_z = jnp.pad(b_ih[H:2 * H] + b_hh[H:2 * H], (0, Hp - H))
    b_rz = jnp.concatenate([b_r, b_z]).reshape(1, 2 * Hp)
    b_in = jnp.pad(b_ih[2 * H:], (0, Hp - H)).reshape(1, Hp)
    b_hn = jnp.pad(b_hh[2 * H:], (0, Hp - H)).reshape(1, Hp)

    wout_p = jnp.pad(params["w_out"].T, ((0, Hp - H), (0, Vp - V)))        # (Hp, Vp)
    bout_p = jnp.pad(params["b_out"], (0, Vp - V),
                     constant_values=-1e30).reshape(1, Vp)                 # mask pad lanes

    kernel = functools.partial(decoder_rnn_kernel, seq_len=T, hp=Hp)
    vmem = pl.BlockSpec(memory_space=pltpu.MemorySpace.VMEM)
    logp_p, hout_p = pl.pallas_call(
        kernel,
        out_shape=(jax.ShapeDtypeStruct((B, Vp), jnp.float32),
                   jax.ShapeDtypeStruct((1, B, Hp), jnp.float32)),
        in_specs=[vmem] * 9,
        out_specs=(vmem, vmem),
    )(x_p, h0_p, wih_p, whh_p, b_rz, b_in, b_hn, wout_p, bout_p)

    # TODO(synk): at production sizes (e.g. V=32K) tile the Linear/LogSoftmax head
    # over V with a lane-dense (B, Vt) output block (mandatory on v7x's 64 MiB VMEM).
    return logp_p[:, :V], hout_p[:, :, :H]


def reference_forward(token_ids, hidden, params):
    """Pure-JAX reference matching the PyTorch forward semantics."""
    x = jnp.take(params["embedding"], token_ids, axis=0)
    x = jnp.maximum(x, 0.0)
    h = hidden[0]
    H = h.shape[-1]
    outs = []
    for t in range(x.shape[0]):
        gi = x[t] @ params["w_ih"].T + params["b_ih"]
        gh = h @ params["w_hh"].T + params["b_hh"]
        r = jax.nn.sigmoid(gi[:, :H] + gh[:, :H])
        z = jax.nn.sigmoid(gi[:, H:2 * H] + gh[:, H:2 * H])
        n = jnp.tanh(gi[:, 2 * H:] + r * gh[:, 2 * H:])
        h = (1.0 - z) * n + z * h
        outs.append(h)
    logits = outs[0] @ params["w_out"].T + params["b_out"]
    logp = jax.nn.log_softmax(logits, axis=1)
    return logp, h[None]


def init_params(key, hidden_size, output_size, embedding_size):
    ks = jax.random.split(key, 7)
    s = 1.0 / jnp.sqrt(jnp.float32(hidden_size))
    return {
        "embedding": jax.random.normal(ks[0], (output_size, embedding_size), jnp.float32) * 0.1,
        "w_ih": jax.random.uniform(ks[1], (3 * hidden_size, embedding_size), jnp.float32, -s, s),
        "w_hh": jax.random.uniform(ks[2], (3 * hidden_size, hidden_size), jnp.float32, -s, s),
        "b_ih": jax.random.uniform(ks[3], (3 * hidden_size,), jnp.float32, -s, s),
        "b_hh": jax.random.uniform(ks[4], (3 * hidden_size,), jnp.float32, -s, s),
        "w_out": jax.random.uniform(ks[5], (output_size, hidden_size), jnp.float32, -s, s),
        "b_out": jax.random.uniform(ks[6], (output_size,), jnp.float32, -s, s),
    }


if __name__ == "__main__":
    T, B = 4, 8            # seq_len, batch
    H, E, V = 32, 32, 64   # hidden_size, embedding_size, output_size (vocab)

    key = jax.random.PRNGKey(0)
    kp, kt, kh = jax.random.split(key, 3)
    params = init_params(kp, H, V, E)
    token_ids = jax.random.randint(kt, (T, B), 0, V, dtype=jnp.int32)
    hidden0 = jax.random.normal(kh, (1, B, H), jnp.float32) * 0.1

    logp, h_out = jax.block_until_ready(decoder_rnn_forward(token_ids, hidden0, params))
    logp_ref, h_ref = reference_forward(token_ids, hidden0, params)

    assert logp.shape == (B, V) and h_out.shape == (1, B, H)
    assert jnp.allclose(logp, logp_ref, atol=1e-5, rtol=1e-5)
    assert jnp.allclose(h_out, h_ref, atol=1e-5, rtol=1e-5)
    print("KERNEL_OK")
</pallas_src>

<mosaic_0001>
module attributes {stable_mosaic.version = 11 : i64} {
  func.func @decoder_rnn_kernel(%arg0: memref<4x8x128xf32, #tpu.memory_space<vmem>>, %arg1: memref<1x8x128xf32, #tpu.memory_space<vmem>>, %arg2: memref<128x384xf32, #tpu.memory_space<vmem>>, %arg3: memref<128x384xf32, #tpu.memory_space<vmem>>, %arg4: memref<1x256xf32, #tpu.memory_space<vmem>>, %arg5: memref<1x128xf32, #tpu.memory_space<vmem>>, %arg6: memref<1x128xf32, #tpu.memory_space<vmem>>, %arg7: memref<128x128xf32, #tpu.memory_space<vmem>>, %arg8: memref<1x128xf32, #tpu.memory_space<vmem>>, %arg9: memref<8x128xf32, #tpu.memory_space<vmem>>, %arg10: memref<1x8x128xf32, #tpu.memory_space<vmem>>) attributes {dimension_semantics = [], scalar_prefetch = 0 : i64, scratch_operands = 0 : i64, tpu.core_type = #tpu.core_type<tc>} {
    %c0 = arith.constant 0 : index
    %c0_0 = arith.constant 0 : index
    %c0_1 = arith.constant 0 : index
    %0 = vector.load %arg0[%c0, %c0_0, %c0_1] : memref<4x8x128xf32, #tpu.memory_space<vmem>>, vector<4x8x128xf32>
    %cst = arith.constant 0.000000e+00 : f32
    %1 = vector.broadcast %cst : f32 to vector<4x8x128xf32>
    %2 = arith.maximumf %0, %1 : vector<4x8x128xf32>
    %c0_2 = arith.constant 0 : index
    %c0_3 = arith.constant 0 : index
    %3 = vector.load %arg2[%c0_2, %c0_3] : memref<128x384xf32, #tpu.memory_space<vmem>>, vector<128x384xf32>
    %c0_4 = arith.constant 0 : index
    %c0_5 = arith.constant 0 : index
    %4 = vector.load %arg3[%c0_4, %c0_5] : memref<128x384xf32, #tpu.memory_space<vmem>>, vector<128x384xf32>
    %c0_6 = arith.constant 0 : index
    %c0_7 = arith.constant 0 : index
    %5 = vector.load %arg4[%c0_6, %c0_7] : memref<1x256xf32, #tpu.memory_space<vmem>>, vector<1x256xf32>
    %c0_8 = arith.constant 0 : index
    %c0_9 = arith.constant 0 : index
    %6 = vector.load %arg5[%c0_8, %c0_9] : memref<1x128xf32, #tpu.memory_space<vmem>>, vector<1x128xf32>
    %c0_10 = arith.constant 0 : index
    %c0_11 = arith.constant 0 : index
    %7 = vector.load %arg6[%c0_10, %c0_11] : memref<1x128xf32, #tpu.memory_space<vmem>>, vector<1x128xf32>
    %c0_12 = arith.constant 0 : index
    %c0_13 = arith.constant 0 : index
    %c0_14 = arith.constant 0 : index
    %8 = vector.load %arg1[%c0_12, %c0_13, %c0_14] : memref<1x8x128xf32, #tpu.memory_space<vmem>>, vector<1x8x128xf32>
    %9 = vector.shape_cast %8 : vector<1x8x128xf32> to vector<8x128xf32>
    %10 = vector.extract_strided_slice %2 {offsets = [0, 0, 0], sizes = [1, 8, 128], strides = [1, 1, 1]} : vector<4x8x128xf32> to vector<1x8x128xf32>
    %11 = vector.shape_cast %10 : vector<1x8x128xf32> to vector<8x128xf32>
    %cst_15 = arith.constant dense<0.000000e+00> : vector<8x384xf32>
    %12 = tpu.matmul %11, %3, %cst_15 {dimension_numbers = #tpu.dot_dimension_numbers<[1], [0], [0], [1], [0, 0, 1, 1], [], []>} : vector<8x128xf32>, vector<128x384xf32>, vector<8x384xf32> -> vector<8x384xf32>
    %cst_16 = arith.constant dense<0.000000e+00> : vector<8x384xf32>
    %13 = tpu.matmul %9, %4, %cst_16 {dimension_numbers = #tpu.dot_dimension_numbers<[1], [0], [0], [1], [0, 0, 1, 1], [], []>} : vector<8x128xf32>, vector<128x384xf32>, vector<8x384xf32> -> vector<8x384xf32>
    %14 = vector.extract_strided_slice %12 {offsets = [0, 0], sizes = [8, 256], strides = [1, 1]} : vector<8x384xf32> to vector<8x256xf32>
    %15 = vector.extract_strided_slice %13 {offsets = [0, 0], sizes = [8, 256], strides = [1, 1]} : vector<8x384xf32> to vector<8x256xf32>
    %16 = arith.addf %14, %15 : vector<8x256xf32>
    %17 = vector.broadcast %5 : vector<1x256xf32> to vector<8x256xf32>
    %18 = arith.addf %16, %17 : vector<8x256xf32>
    %19 = arith.negf %18 : vector<8x256xf32>
    %20 = math.exp %19 : vector<8x256xf32>
    %cst_17 = arith.constant 1.000000e+00 : f32
    %21 = vector.broadcast %cst_17 : f32 to vector<8x256xf32>
    %22 = arith.addf %21, %20 : vector<8x256xf32>
    %23 = arith.divf %21, %22 : vector<8x256xf32>
    %24 = vector.extract_strided_slice %23 {offsets = [0, 0], sizes = [8, 128], strides = [1, 1]} : vector<8x256xf32> to vector<8x128xf32>
    %25 = vector.extract_strided_slice %23 {offsets = [0, 128], sizes = [8, 128], strides = [1, 1]} : vector<8x256xf32> to vector<8x128xf32>
    %26 = vector.extract_strided_slice %12 {offsets = [0, 256], sizes = [8, 128], strides = [1, 1]} : vector<8x384xf32> to vector<8x128xf32>
    %27 = vector.broadcast %6 : vector<1x128xf32> to vector<8x128xf32>
    %28 = arith.addf %26, %27 : vector<8x128xf32>
    %29 = vector.extract_strided_slice %13 {offsets = [0, 256], sizes = [8, 128], strides = [1, 1]} : vector<8x384xf32> to vector<8x128xf32>
    %30 = vector.broadcast %7 : vector<1x128xf32> to vector<8x128xf32>
    %31 = arith.addf %29, %30 : vector<8x128xf32>
    %32 = arith.mulf %24, %31 : vector<8x128xf32>
    %33 = arith.addf %28, %32 : vector<8x128xf32>
    %34 = math.tanh %33 : vector<8x128xf32>
    %cst_18 = arith.constant 1.000000e+00 : f32
    %35 = vector.broadcast %cst_18 : f32 to vector<8x128xf32>
    %36 = arith.subf %35, %25 : vector<8x128xf32>
    %37 = arith.mulf %36, %34 : vector<8x128xf32>
    %38 = arith.mulf %25, %9 : vector<8x128xf32>
    %39 = arith.addf %37, %38 : vector<8x128xf32>
    %40 = vector.extract_strided_slice %2 {offsets = [1, 0, 0], sizes = [1, 8, 128], strides = [1, 1, 1]} : vector<4x8x128xf32> to vector<1x8x128xf32>
    %41 = vector.shape_cast %40 : vector<1x8x128xf32> to vector<8x128xf32>
    %cst_19 = arith.constant dense<0.000000e+00> : vector<8x384xf32>
    %42 = tpu.matmul %41, %3, %cst_19 {dimension_numbers = #tpu.dot_dimension_numbers<[1], [0], [0], [1], [0, 0, 1, 1], [], []>} : vector<8x128xf32>, vector<128x384xf32>, vector<8x384xf32> -> vector<8x384xf32>
    %cst_20 = arith.constant dense<0.000000e+00> : vector<8x384xf32>
    %43 = tpu.matmul %39, %4, %cst_20 {dimension_numbers = #tpu.dot_dimension_numbers<[1], [0], [0], [1], [0, 0, 1, 1], [], []>} : vector<8x128xf32>, vector<128x384xf32>, vector<8x384xf32> -> vector<8x384xf32>
    %44 = vector.extract_strided_slice %42 {offsets = [0, 0], sizes = [8, 256], strides = [1, 1]} : vector<8x384xf32> to vector<8x256xf32>
    %45 = vector.extract_strided_slice %43 {offsets = [0, 0], sizes = [8, 256], strides = [1, 1]} : vector<8x384xf32> to vector<8x256xf32>
    %46 = arith.addf %44, %45 : vector<8x256xf32>
    %47 = vector.broadcast %5 : vector<1x256xf32> to vector<8x256xf32>
    %48 = arith.addf %46, %47 : vector<8x256xf32>
    %49 = arith.negf %48 : vector<8x256xf32>
    %50 = math.exp %49 : vector<8x256xf32>
    %cst_21 = arith.constant 1.000000e+00 : f32
    %51 = vector.broadcast %cst_21 : f32 to vector<8x256xf32>
    %52 = arith.addf %51, %50 : vector<8x256xf32>
    %53 = arith.divf %51, %52 : vector<8x256xf32>
    %54 = vector.extract_strided_slice %53 {offsets = [0, 0], sizes = [8, 128], strides = [1, 1]} : vector<8x256xf32> to vector<8x128xf32>
    %55 = vector.extract_strided_slice %53 {offsets = [0, 128], sizes = [8, 128], strides = [1, 1]} : vector<8x256xf32> to vector<8x128xf32>
    %56 = vector.extract_strided_slice %42 {offsets = [0, 256], sizes = [8, 128], strides = [1, 1]} : vector<8x384xf32> to vector<8x128xf32>
    %57 = vector.broadcast %6 : vector<1x128xf32> to vector<8x128xf32>
    %58 = arith.addf %56, %57 : vector<8x128xf32>
    %59 = vector.extract_strided_slice %43 {offsets = [0, 256], sizes = [8, 128], strides = [1, 1]} : vector<8x384xf32> to vector<8x128xf32>
    %60 = vector.broadcast %7 : vector<1x128xf32> to vector<8x128xf32>
    %61 = arith.addf %59, %60 : vector<8x128xf32>
    %62 = arith.mulf %54, %61 : vector<8x128xf32>
    %63 = arith.addf %58, %62 : vector<8x128xf32>
    %64 = math.tanh %63 : vector<8x128xf32>
    %cst_22 = arith.constant 1.000000e+00 : f32
    %65 = vector.broadcast %cst_22 : f32 to vector<8x128xf32>
    %66 = arith.subf %65, %55 : vector<8x128xf32>
    %67 = arith.mulf %66, %64 : vector<8x128xf32>
    %68 = arith.mulf %55, %39 : vector<8x128xf32>
    %69 = arith.addf %67, %68 : vector<8x128xf32>
    %70 = vector.extract_strided_slice %2 {offsets = [2, 0, 0], sizes = [1, 8, 128], strides = [1, 1, 1]} : vector<4x8x128xf32> to vector<1x8x128xf32>
    %71 = vector.shape_cast %70 : vector<1x8x128xf32> to vector<8x128xf32>
    %cst_23 = arith.constant dense<0.000000e+00> : vector<8x384xf32>
    %72 = tpu.matmul %71, %3, %cst_23 {dimension_numbers = #tpu.dot_dimension_numbers<[1], [0], [0], [1], [0, 0, 1, 1], [], []>} : vector<8x128xf32>, vector<128x384xf32>, vector<8x384xf32> -> vector<8x384xf32>
    %cst_24 = arith.constant dense<0.000000e+00> : vector<8x384xf32>
    %73 = tpu.matmul %69, %4, %cst_24 {dimension_numbers = #tpu.dot_dimension_numbers<[1], [0], [0], [1], [0, 0, 1, 1], [], []>} : vector<8x128xf32>, vector<128x384xf32>, vector<8x384xf32> -> vector<8x384xf32>
    %74 = vector.extract_strided_slice %72 {offsets = [0, 0], sizes = [8, 256], strides = [1, 1]} : vector<8x384xf32> to vector<8x256xf32>
    %75 = vector.extract_strided_slice %73 {offsets = [0, 0], sizes = [8, 256], strides = [1, 1]} : vector<8x384xf32> to vector<8x256xf32>
    %76 = arith.addf %74, %75 : vector<8x256xf32>
    %77 = vector.broadcast %5 : vector<1x256xf32> to vector<8x256xf32>
    %78 = arith.addf %76, %77 : vector<8x256xf32>
    %79 = arith.negf %78 : vector<8x256xf32>
    %80 = math.exp %79 : vector<8x256xf32>
    %cst_25 = arith.constant 1.000000e+00 : f32
    %81 = vector.broadcast %cst_25 : f32 to vector<8x256xf32>
    %82 = arith.addf %81, %80 : vector<8x256xf32>
    %83 = arith.divf %81, %82 : vector<8x256xf32>
    %84 = vector.extract_strided_slice %83 {offsets = [0, 0], sizes = [8, 128], strides = [1, 1]} : vector<8x256xf32> to vector<8x128xf32>
    %85 = vector.extract_strided_slice %83 {offsets = [0, 128], sizes = [8, 128], strides = [1, 1]} : vector<8x256xf32> to vector<8x128xf32>
    %86 = vector.extract_strided_slice %72 {offsets = [0, 256], sizes = [8, 128], strides = [1, 1]} : vector<8x384xf32> to vector<8x128xf32>
    %87 = vector.broadcast %6 : vector<1x128xf32> to vector<8x128xf32>
    %88 = arith.addf %86, %87 : vector<8x128xf32>
    %89 = vector.extract_strided_slice %73 {offsets = [0, 256], sizes = [8, 128], strides = [1, 1]} : vector<8x384xf32> to vector<8x128xf32>
    %90 = vector.broadcast %7 : vector<1x128xf32> to vector<8x128xf32>
    %91 = arith.addf %89, %90 : vector<8x128xf32>
    %92 = arith.mulf %84, %91 : vector<8x128xf32>
    %93 = arith.addf %88, %92 : vector<8x128xf32>
    %94 = math.tanh %93 : vector<8x128xf32>
    %cst_26 = arith.constant 1.000000e+00 : f32
    %95 = vector.broadcast %cst_26 : f32 to vector<8x128xf32>
    %96 = arith.subf %95, %85 : vector<8x128xf32>
    %97 = arith.mulf %96, %94 : vector<8x128xf32>
    %98 = arith.mulf %85, %69 : vector<8x128xf32>
    %99 = arith.addf %97, %98 : vector<8x128xf32>
    %100 = vector.extract_strided_slice %2 {offsets = [3, 0, 0], sizes = [1, 8, 128], strides = [1, 1, 1]} : vector<4x8x128xf32> to vector<1x8x128xf32>
    %101 = vector.shape_cast %100 : vector<1x8x128xf32> to vector<8x128xf32>
    %cst_27 = arith.constant dense<0.000000e+00> : vector<8x384xf32>
    %102 = tpu.matmul %101, %3, %cst_27 {dimension_numbers = #tpu.dot_dimension_numbers<[1], [0], [0], [1], [0, 0, 1, 1], [], []>} : vector<8x128xf32>, vector<128x384xf32>, vector<8x384xf32> -> vector<8x384xf32>
    %cst_28 = arith.constant dense<0.000000e+00> : vector<8x384xf32>
    %103 = tpu.matmul %99, %4, %cst_28 {dimension_numbers = #tpu.dot_dimension_numbers<[1], [0], [0], [1], [0, 0, 1, 1], [], []>} : vector<8x128xf32>, vector<128x384xf32>, vector<8x384xf32> -> vector<8x384xf32>
    %104 = vector.extract_strided_slice %102 {offsets = [0, 0], sizes = [8, 256], strides = [1, 1]} : vector<8x384xf32> to vector<8x256xf32>
    %105 = vector.extract_strided_slice %103 {offsets = [0, 0], sizes = [8, 256], strides = [1, 1]} : vector<8x384xf32> to vector<8x256xf32>
    %106 = arith.addf %104, %105 : vector<8x256xf32>
    %107 = vector.broadcast %5 : vector<1x256xf32> to vector<8x256xf32>
    %108 = arith.addf %106, %107 : vector<8x256xf32>
    %109 = arith.negf %108 : vector<8x256xf32>
    %110 = math.exp %109 : vector<8x256xf32>
    %cst_29 = arith.constant 1.000000e+00 : f32
    %111 = vector.broadcast %cst_29 : f32 to vector<8x256xf32>
    %112 = arith.addf %111, %110 : vector<8x256xf32>
    %113 = arith.divf %111, %112 : vector<8x256xf32>
    %114 = vector.extract_strided_slice %113 {offsets = [0, 0], sizes = [8, 128], strides = [1, 1]} : vector<8x256xf32> to vector<8x128xf32>
    %115 = vector.extract_strided_slice %113 {offsets = [0, 128], sizes = [8, 128], strides = [1, 1]} : vector<8x256xf32> to vector<8x128xf32>
    %116 = vector.extract_strided_slice %102 {offsets = [0, 256], sizes = [8, 128], strides = [1, 1]} : vector<8x384xf32> to vector<8x128xf32>
    %117 = vector.broadcast %6 : vector<1x128xf32> to vector<8x128xf32>
    %118 = arith.addf %116, %117 : vector<8x128xf32>
    %119 = vector.extract_strided_slice %103 {offsets = [0, 256], sizes = [8, 128], strides = [1, 1]} : vector<8x384xf32> to vector<8x128xf32>
    %120 = vector.broadcast %7 : vector<1x128xf32> to vector<8x128xf32>
    %121 = arith.addf %119, %120 : vector<8x128xf32>
    %122 = arith.mulf %114, %121 : vector<8x128xf32>
    %123 = arith.addf %118, %122 : vector<8x128xf32>
    %124 = math.tanh %123 : vector<8x128xf32>
    %cst_30 = arith.constant 1.000000e+00 : f32
    %125 = vector.broadcast %cst_30 : f32 to vector<8x128xf32>
    %126 = arith.subf %125, %115 : vector<8x128xf32>
    %127 = arith.mulf %126, %124 : vector<8x128xf32>
    %128 = arith.mulf %115, %99 : vector<8x128xf32>
    %129 = arith.addf %127, %128 : vector<8x128xf32>
    %c0_31 = arith.constant 0 : index
    %c0_32 = arith.constant 0 : index
    %c0_33 = arith.constant 0 : index
    %130 = vector.load %arg10[%c0_31, %c0_32, %c0_33] : memref<1x8x128xf32, #tpu.memory_space<vmem>>, vector<1x8x128xf32>
    %131 = vector.shape_cast %130 : vector<1x8x128xf32> to vector<8x128xf32>
    %132 = vector.shape_cast %129 : vector<8x128xf32> to vector<1x8x128xf32>
    tpu.vector_store %arg10[%c0_31, %c0_32, %c0_33], %132 {strides = array<i32>} : memref<1x8x128xf32, #tpu.memory_space<vmem>>, vector<1x8x128xf32>,
    %c0_34 = arith.constant 0 : index
    %c0_35 = arith.constant 0 : index
    %133 = vector.load %arg7[%c0_34, %c0_35] : memref<128x128xf32, #tpu.memory_space<vmem>>, vector<128x128xf32>
    %cst_36 = arith.constant dense<0.000000e+00> : vector<8x128xf32>
    %134 = tpu.matmul %39, %133, %cst_36 {dimension_numbers = #tpu.dot_dimension_numbers<[1], [0], [0], [1], [0, 0, 1, 1], [], []>} : vector<8x128xf32>, vector<128x128xf32>, vector<8x128xf32> -> vector<8x128xf32>
    %c0_37 = arith.constant 0 : index
    %c0_38 = arith.constant 0 : index
    %135 = vector.load %arg8[%c0_37, %c0_38] : memref<1x128xf32, #tpu.memory_space<vmem>>, vector<1x128xf32>
    %136 = vector.broadcast %135 : vector<1x128xf32> to vector<8x128xf32>
    %137 = arith.addf %134, %136 : vector<8x128xf32>
    %cst_39 = arith.constant dense<0xFF800000> : vector<8xf32>
    %138 = vector.multi_reduction <maximumf>, %137, %cst_39 [1] : vector<8x128xf32> to vector<8xf32>
    %139 = vector.shape_cast %138 : vector<8xf32> to vector<8x1xf32>
    %140 = vector.broadcast %139 : vector<8x1xf32> to vector<8x128xf32>
    %141 = arith.subf %137, %140 : vector<8x128xf32>
    %142 = math.exp %141 : vector<8x128xf32>
    %cst_40 = arith.constant dense<0.000000e+00> : vector<8xf32>
    %143 = vector.multi_reduction <add>, %142, %cst_40 [1] : vector<8x128xf32> to vector<8xf32>
    %144 = vector.shape_cast %143 : vector<8xf32> to vector<8x1xf32>
    %145 = math.log %144 : vector<8x1xf32>
    %146 = arith.addf %139, %145 : vector<8x1xf32>
    %147 = vector.broadcast %146 : vector<8x1xf32> to vector<8x128xf32>
    %148 = arith.subf %137, %147 : vector<8x128xf32>
    %c0_41 = arith.constant 0 : index
    %c0_42 = arith.constant 0 : index
    %149 = vector.load %arg9[%c0_41, %c0_42] : memref<8x128xf32, #tpu.memory_space<vmem>>, vector<8x128xf32>
    tpu.vector_store %arg9[%c0_41, %c0_42], %148 {strides = array<i32>} : memref<8x128xf32, #tpu.memory_space<vmem>>, vector<8x128xf32>,
    return
  }
}

</mosaic_0001>

<bundles_post_ra>
// kernel: tpu_custom_call.1
= control target key start
LH: loop header
LB: loop body
LE: loop exit
PB: predicated region body
PF: predicated region fallthrough
CT: control target
= control target key end

     0   :  { %16 = vsyncpa [#allocation3], 0  ;;  %s3185_s0 = inlined_call_operand.hbm [shape: f32[4,8,128], index: 0, kind: input, shape index: {}]   ;;  %s3186_s1 = inlined_call_operand.hbm [shape: f32[1,8,128], index: 1, kind: input, shape index: {}]   ;;  %s3187_s2 = inlined_call_operand.hbm [shape: f32[128,384], index: 2, kind: input, shape index: {}]   ;;  %s3188_s3 = inlined_call_operand.hbm [shape: f32[128,384], index: 3, kind: input, shape index: {}]   ;;  %s3189_s4 = inlined_call_operand.vmem [shape: f32[1,256], index: 4, kind: input, shape index: {}]   ;;  %s3190_s5 = inlined_call_operand.vmem [shape: f32[1,128], index: 5, kind: input, shape index: {}]   ;;  %s3191_s6 = inlined_call_operand.vmem [shape: f32[1,128], index: 6, kind: input, shape index: {}]   ;;  %s3192_s7 = inlined_call_operand.hbm [shape: f32[128,128], index: 7, kind: input, shape index: {}]   ;;  %s3193_s8 = inlined_call_operand.vmem [shape: f32[1,128], index: 8, kind: input, shape index: {}]   ;;  %s3194_s9 = inlined_call_operand.hbm [shape: f32[8,128], index: 9, kind: output, shape index: {0}]   ;;  %s3195_s10 = inlined_call_operand.hbm [shape: f32[1,8,128], index: 10, kind: output, shape index: {1}]  }
   0x1   :  { %17 = vsyncpa [#allocation6], 0 }
   0x2   :  { %18 = vsyncpa [#allocation9], 0 }
   0x3   :  { %19 = vsyncpa [#allocation4], 0 }
   0x4   :  { %20 = vsyncpa [#allocation13], 0  ;;  %s2367_s13 = smov [#allocation5]  }
   0x5   :  { %s39_s14 = sshll.u32 %s2367_s13, 4  ;;  %s40_s14 = int_to_ptr.vmem [resolvable:$true] %s39_s14 }
   0x6   :  { %s2225_s15 = scalar_lea.vmem %s40_s14, 128  ;;  %p2230_p1 = scmp.lt.s32.totalorder %s40_s14, %s40_s14 }
   0x7   :  { %p2226_p0 = scmp.ne.s32.totalorder %s40_s14, %s2225_s15  ;;  %p2231_p2 = scmp.lt.s32.totalorder %s2225_s15, %s2225_s15 }
   0x9   :  { %p2232_p3 = por %p2231_p2, %p2230_p1 }
   0xb   :  { %p2233_p4 = pnand %p2232_p3, %p2226_p0 }
   0xd   :  { %2236 = shalt.err (!%p2233_p4)
}
   0xe   :  { %42 = dma.hbm_to_vmem [thread:$0]  %s3186_s1, 128, %s40_s14, [#allocation6]  }
   0xf   :  { %s2368_s18 = smov [#allocation8]   ;;  %s2369_s20 = smov [#allocation2]  }
  0x10   :  { %s60_s19 = sshll.u32 %s2368_s18, 4  ;;  %s26_s21 = sshll.u32 %s2369_s20, 4  ;;  %s61_s19 = int_to_ptr.vmem [resolvable:$true] %s60_s19  ;;  %s27_s21 = int_to_ptr.vmem [resolvable:$true] %s26_s21 }
  0x11   :  { %s2245_s22 = scalar_lea.vmem %s61_s19, 6144  ;;  %p2250_p6 = scmp.lt.s32.totalorder %s61_s19, %s61_s19 }
  0x12   :  { %p2246_p5 = scmp.ne.s32.totalorder %s61_s19, %s2245_s22  ;;  %p2251_p7 = scmp.lt.s32.totalorder %s2245_s22, %s2245_s22 }
  0x14   :  { %p2252_p8 = por %p2251_p7, %p2250_p6 }
  0x16   :  { %p2253_p9 = pnand %p2252_p8, %p2246_p5 }
  0x18   :  { %2256 = shalt.err (!%p2253_p9)
}
  0x19   :  { %s2370_s23 = smov 384   ;;  %s2371_s24 = smov 24  }
  0x1a   :  { %66 = dma.hbm_to_vmem [thread:$0]  %s3188_s3, 6144, %s61_s19, [#allocation9], %s2370_s23, %s2370_s23, %s2371_s24  }
  0x1b   :  { %s2265_s1 = scalar_lea.vmem %s27_s21, 512  ;;  %p2270_p11 = scmp.lt.s32.totalorder %s27_s21, %s27_s21 }
  0x1c   :  { %p2266_p10 = scmp.ne.s32.totalorder %s27_s21, %s2265_s1  ;;  %p2271_p12 = scmp.lt.s32.totalorder %s2265_s1, %s2265_s1 }
  0x1e   :  { %p2272_p13 = por %p2271_p12, %p2270_p11 }
  0x20   :  { %p2273_p0 = pnand %p2272_p13, %p2266_p10 }
  0x22   :  { %2276 = shalt.err (!%p2273_p0)
}
  0x23   :  { %s2372_s27 = smov 128   ;;  %s2373_s28 = smov 8  }
  0x24   :  { %32 = dma.hbm_to_vmem [thread:$0]  %s3185_s0, 512, %s27_s21, [#allocation3], %s2372_s27, %s2372_s27, %s2373_s28  }
  0x25   :  { %s2374_s11 = smov [#allocation7]   ;;  %s2375_s13 = smov [#allocation10]  }
  0x26   :  { %s48_s12 = sshll.u32 %s2374_s11, 4  ;;  %s78_s14 = sshll.u32 %s2375_s13, 4  ;;  %s49_s12 = int_to_ptr.vmem [resolvable:$true] %s48_s12  ;;  %s79_s14 = int_to_ptr.vmem [resolvable:$true] %s78_s14 }
  0x27   :  { %s2285_s3 = scalar_lea.vmem %s49_s12, 6144  ;;  %p2290_p2 = scmp.lt.s32.totalorder %s49_s12, %s49_s12 }
  0x28   :  { %p2286_p1 = scmp.ne.s32.totalorder %s49_s12, %s2285_s3  ;;  %p2291_p3 = scmp.lt.s32.totalorder %s2285_s3, %s2285_s3 }
  0x2a   :  { %p2292_p4 = por %p2291_p3, %p2290_p2 }
  0x2c   :  { %p2293_p5 = pnand %p2292_p4, %p2286_p1 }
  0x2e   :  { %2296 = shalt.err (!%p2293_p5)
}
  0x2f   :  { %54 = dma.hbm_to_vmem [thread:$0]  %s3187_s2, 6144, %s49_s12, [#allocation6], %s2370_s23, %s2370_s23, %s2371_s24  }
  0x30   :  { %s2305_s17 = scalar_lea.vmem %s79_s14, 2048  ;;  %p2310_p7 = scmp.lt.s32.totalorder %s79_s14, %s79_s14 }
  0x31   :  { %p2306_p6 = scmp.ne.s32.totalorder %s79_s14, %s2305_s17  ;;  %p2311_p8 = scmp.lt.s32.totalorder %s2305_s17, %s2305_s17 }
  0x33   :  { %p2312_p9 = por %p2311_p8, %p2310_p7 }
  0x35   :  { %p2313_p10 = pnand %p2312_p9, %p2306_p6 }
  0x37   :  { %2316 = shalt.err (!%p2313_p10)
}
  0x38   :  { %84 = dma.hbm_to_vmem [thread:$0]  %s3192_s7, 2048, %s79_s14, [#allocation9], %s2372_s27, %s2372_s27, %s2373_s28  }
  0x39   :  { %2357 = dma.done.wait [#allocation3], 512  }
  0x3a   :  { %2358 = vsyncadd [#allocation3], 4294966784 }
  0x3b   :  { %2359 = dma.done.wait [#allocation6], 6272  }
  0x3c   :  { %2360 = vsyncadd [#allocation6], 4294961024 }
  0x3d   :  { %2361 = dma.done.wait [#allocation9], 8192  }
  0x3e   :  { %2362 = vsyncadd [#allocation9], 4294959104  ;;  %v3290_v0 = vmov 0.0   ;;  %vm2377_vm0 = vmmov 0   ;;  %v2454_v1 = vld [vmem:[#allocation7 + $0x170] sm:$0xff]  ;;  %v2456_v2 = vld [vmem:[#allocation7 + $0x168] sm:$0xff] }
  0x3f   :  { %274 = vmatprep.mubr.f32.mxu0 %v3290_v0  ;;  %1762 = vmatprep.subr.mxu1 %v3290_v0  ;;  %3293 = vst [vmem:[#allocation19_spill] sm:$0xff] %v2454_v1  ;;  %v2458_v3 = vld [vmem:[#allocation7 + $0x158] sm:$0xff]  ;;  %v2461_v4 = vld [vmem:[#allocation7 + $0x150] sm:$0xff]  ;;  %v2464_v5 = vld [vmem:[#allocation7 + $0x140] sm:$0xff] }
  0x40   :  { %1794 = vmatprep.mubr.msk.f32.mxu1 %vm2377_vm0, %v3290_v0  ;;  %3294 = vst [vmem:[#allocation20_spill] sm:$0xff] %v2458_v3  ;;  %210 = vmatprep.subr.mxu0 %v2454_v1  ;;  %v2467_v6 = vld [vmem:[#allocation7 + $0x138] sm:$0xff]  ;;  %v2470_v7 = vld [vmem:[#allocation7 + $0x128] sm:$0xff]  ;;  %v2473_v8 = vld [vmem:[#allocation7 + $0x120] sm:$0xff] }
  0x41   :  { %211 = vmatpush1.msra.mxu0 %v2456_v2  ;;  %v2476_v9 = vld [vmem:[#allocation7 + $0x110] sm:$0xff]  ;;  %v2479_v10 = vld [vmem:[#allocation7 + $0x108] sm:$0xff]  ;;  %v2482_v11 = vld [vmem:[#allocation7 + $0xf8] sm:$0xff] }
  0x42   :  { %212 = vmatprep.subr.mxu0 %v2458_v3  ;;  %v2485_v12 = vld [vmem:[#allocation7 + $0xf0] sm:$0xff]  ;;  %v2488_v13 = vld [vmem:[#allocation7 + $0xe0] sm:$0xff]  ;;  %v2491_v14 = vld [vmem:[#allocation7 + $0xd8] sm:$0xff] }
  0x43   :  { %213 = vmatpush1.msra.mxu0 %v2461_v4  ;;  %v2493_v15 = vld [vmem:[#allocation7 + $0x178] sm:$0xff]  ;;  %v2496_v16 = vld [vmem:[#allocation7 + $0xc8] sm:$0xff]  ;;  %v2499_v17 = vld [vmem:[#allocation7 + $0x160] sm:$0xff] }
  0x44   :  { %214 = vmatprep.subr.mxu0 %v2464_v5  ;;  %1763 = vmatpush3.msra.mxu1 %v2493_v15  ;;  %v2502_v18 = vld [vmem:[#allocation7 + $0xc0] sm:$0xff]  ;;  %v2505_v19 = vld [vmem:[#allocation7 + $0x148] sm:$0xff]  ;;  %v2508_v20 = vld [vmem:[#allocation7 + $0xb0] sm:$0xff] }
  0x45   :  { %215 = vmatpush1.msra.mxu0 %v2467_v6  ;;  %1764 = vmatprep.subr.mxu1 %v3290_v0  ;;  %v2512_v21 = vld [vmem:[#allocation7 + $0xa8] sm:$0xff]  ;;  %v2515_v22 = vld [vmem:[#allocation7 + $0x130] sm:$0xff]  ;;  %v2518_v23 = vld [vmem:[#allocation7 + $0x98] sm:$0xff] }
  0x46   :  { %216 = vmatprep.subr.mxu0 %v2470_v7  ;;  %1765 = vmatpush3.msra.mxu1 %v2499_v17  ;;  %v2522_v24 = vld [vmem:[#allocation7 + $0x90] sm:$0xff]  ;;  %v2525_v25 = vld [vmem:[#allocation7 + $0x118] sm:$0xff]  ;;  %v2528_v26 = vld [vmem:[#allocation7 + $0x80] sm:$0xff] }
  0x47   :  { %217 = vmatpush1.msra.mxu0 %v2473_v8  ;;  %1766 = vmatprep.subr.mxu1 %v3290_v0  ;;  %v2532_v27 = vld [vmem:[#allocation7 + $0x78] sm:$0xff]  ;;  %v2535_v28 = vld [vmem:[#allocation7 + $0x100] sm:$0xff]  ;;  %v2538_v29 = vld [vmem:[#allocation7 + $0x68] sm:$0xff] }
  0x48   :  { %218 = vmatprep.subr.mxu0 %v2476_v9  ;;  %1767 = vmatpush3.msra.mxu1 %v2505_v19  ;;  %v2542_v30 = vld [vmem:[#allocation7 + $0x60] sm:$0xff]  ;;  %v2545_v31 = vld [vmem:[#allocation7 + $0xe8] sm:$0xff]  ;;  %v2548_v32 = vld [vmem:[#allocation7 + $0x50] sm:$0xff] }
  0x49   :  { %219 = vmatpush1.msra.mxu0 %v2479_v10  ;;  %1768 = vmatprep.subr.mxu1 %v3290_v0  ;;  %v2552_v33 = vld [vmem:[#allocation7 + $0x48] sm:$0xff]  ;;  %v2555_v34 = vld [vmem:[#allocation7 + $0xd0] sm:$0xff]  ;;  %v2558_v35 = vld [vmem:[#allocation7 + $0x38] sm:$0xff] }
  0x4a   :  { %220 = vmatprep.subr.mxu0 %v2482_v11  ;;  %1769 = vmatpush3.msra.mxu1 %v2515_v22  ;;  %v2562_v36 = vld [vmem:[#allocation7 + $0x30] sm:$0xff]  ;;  %v2565_v37 = vld [vmem:[#allocation7 + $0xb8] sm:$0xff]  ;;  %v2568_v38 = vld [vmem:[#allocation7 + $0x20] sm:$0xff] }
  0x4b   :  { %221 = vmatpush1.msra.mxu0 %v2485_v12  ;;  %1770 = vmatprep.subr.mxu1 %v3290_v0  ;;  %v2570_v39 = vld [vmem:[#allocation2] sm:$0xff]  ;;  %v2577_v41 = vld [vmem:[#allocation7 + $0xa0] sm:$0xff]  ;;  %v2580_v42 = vld [vmem:[#allocation7 + $0x8] sm:$0xff] }
  0x4c   :  { %222 = vmatprep.subr.mxu0 %v2488_v13  ;;  %1771 = vmatpush3.msra.mxu1 %v2525_v25  ;;  %v2574_v40 = vld [vmem:[#allocation7 + $0x18] sm:$0xff]  ;;  %3295 = vst [vmem:[#allocation21_spill] sm:$0xff] %v2580_v42  ;;  %v2584_v43 = vld [vmem:[#allocation7] sm:$0xff]  ;;  %v106_v44 = vmax.f32 %v2570_v39, 0.0  ;;  %v2588_v45 = vld [vmem:[#allocation7 + $0x88] sm:$0xff] }
  0x4d   :  { %223 = vmatpush1.msra.mxu0 %v2491_v14  ;;  %1772 = vmatprep.subr.mxu1 %v3290_v0  ;;  %3296 = vst [vmem:[#allocation22_spill] sm:$0xff] %v2584_v43  ;;  %v2591_v46 = vld [vmem:[#allocation8 + $0x170] sm:$0xff]  ;;  %v2595_v47 = vld [vmem:[#allocation8 + $0x168] sm:$0xff]  ;;  %v2599_v48 = vld [vmem:[#allocation8 + $0x158] sm:$0xff] }
  0x4e   :  { %224 = vmatprep.subr.mxu0 %v2496_v16  ;;  %1773 = vmatpush3.msra.mxu1 %v2535_v28  ;;  %3297 = vst [vmem:[#allocation23_spill] sm:$0xff] %v2591_v46  ;;  %3298 = vst [vmem:[#allocation24_spill] sm:$0xff] %v2595_v47  ;;  %v2602_v49 = vld [vmem:[#allocation7 + $0x70] sm:$0xff]  ;;  %v2608_v51 = vld [vmem:[#allocation8 + $0x140] sm:$0xff] }
  0x4f   :  { %225 = vmatpush1.msra.mxu0 %v2502_v18  ;;  %1774 = vmatprep.subr.mxu1 %v3290_v0  ;;  %3299 = vst [vmem:[#allocation25_spill] sm:$0xff] %v2599_v48  ;;  %v2605_v50 = vld [vmem:[#allocation8 + $0x150] sm:$0xff]  ;;  %3301 = vst [vmem:[#allocation27_spill] sm:$0xff] %v2608_v51  ;;  %v2611_v52 = vld [vmem:[#allocation7 + $0x58] sm:$0xff] }
  0x50   :  { %226 = vmatprep.subr.mxu0 %v2508_v20  ;;  %1775 = vmatpush3.msra.mxu1 %v2545_v31  ;;  %3300 = vst [vmem:[#allocation26_spill] sm:$0xff] %v2605_v50  ;;  %v2614_v53 = vld [vmem:[#allocation8 + $0x138] sm:$0xff]  ;;  %v2618_v54 = vld [vmem:[#allocation8 + $0x128] sm:$0xff]  ;;  %v2621_v55 = vld [vmem:[#allocation7 + $0x40] sm:$0xff] }
  0x51   :  { %227 = vmatpush1.msra.mxu0 %v2512_v21  ;;  %1776 = vmatprep.subr.mxu1 %v3290_v0  ;;  %3302 = vst [vmem:[#allocation28_spill] sm:$0xff] %v2614_v53  ;;  %3303 = vst [vmem:[#allocation29_spill] sm:$0xff] %v2618_v54  ;;  %v2624_v56 = vld [vmem:[#allocation8 + $0x120] sm:$0xff]  ;;  %v2628_v57 = vld [vmem:[#allocation8 + $0x110] sm:$0xff] }
  0x52   :  { %228 = vmatprep.subr.mxu0 %v2518_v23  ;;  %1777 = vmatpush3.msra.mxu1 %v2555_v34  ;;  %3304 = vst [vmem:[#allocation30_spill] sm:$0xff] %v2624_v56  ;;  %3305 = vst [vmem:[#allocation31_spill] sm:$0xff] %v2628_v57  ;;  %v2631_v58 = vld [vmem:[#allocation7 + $0x28] sm:$0xff]  ;;  %v2638_v60 = vld [vmem:[#allocation8 + $0xf8] sm:$0xff] }
  0x53   :  { %229 = vmatpush1.msra.mxu0 %v2522_v24  ;;  %1778 = vmatprep.subr.mxu1 %v3290_v0  ;;  %3306 = vst [vmem:[#allocation32_spill] sm:$0xff] %v2631_v58  ;;  %v2634_v59 = vld [vmem:[#allocation8 + $0x108] sm:$0xff]  ;;  %3308 = vst [vmem:[#allocation34_spill] sm:$0xff] %v2638_v60  ;;  %v2641_v61 = vld [vmem:[#allocation7 + $0x10] sm:$0xff] }
  0x54   :  { %230 = vmatprep.subr.mxu0 %v2528_v26  ;;  %1779 = vmatpush3.msra.mxu1 %v2565_v37  ;;  %3307 = vst [vmem:[#allocation33_spill] sm:$0xff] %v2634_v59  ;;  %3309 = vst [vmem:[#allocation35_spill] sm:$0xff] %v2641_v61  ;;  %v2644_v62 = vld [vmem:[#allocation8 + $0xf0] sm:$0xff]  ;;  %v2648_v63 = vld [vmem:[#allocation8 + $0xe0] sm:$0xff] }
  0x55   :  { %231 = vmatpush1.msra.mxu0 %v2532_v27  ;;  %1780 = vmatprep.subr.mxu1 %v3290_v0  ;;  %3310 = vst [vmem:[#allocation36_spill] sm:$0xff] %v2644_v62  ;;  %3311 = vst [vmem:[#allocation37_spill] sm:$0xff] %v2648_v63  ;;  %v2652_v39 = vld [vmem:[#allocation8 + $0xd8] sm:$0xff] }
  0x56   :  { %232 = vmatprep.subr.mxu0 %v2538_v29  ;;  %1781 = vmatpush3.msra.mxu1 %v2577_v41  ;;  %3312 = vst [vmem:[#allocation38_spill] sm:$0xff] %v2652_v39 }
  0x57   :  { %233 = vmatpush1.msra.mxu0 %v2542_v30  ;;  %1782 = vmatprep.subr.mxu1 %v3290_v0 }
  0x58   :  { %234 = vmatprep.subr.mxu0 %v2548_v32  ;;  %1783 = vmatpush3.msra.mxu1 %v2588_v45 }
  0x59   :  { %235 = vmatpush1.msra.mxu0 %v2552_v33  ;;  %1784 = vmatprep.subr.mxu1 %v3290_v0 }
  0x5a   :  { %236 = vmatprep.subr.mxu0 %v2558_v35  ;;  %1785 = vmatpush3.msra.mxu1 %v2602_v49 }
  0x5b   :  { %237 = vmatpush1.msra.mxu0 %v2562_v36  ;;  %1786 = vmatprep.subr.mxu1 %v3290_v0 }
  0x5c   :  { %238 = vmatprep.subr.mxu0 %v2568_v38  ;;  %1787 = vmatpush3.msra.mxu1 %v2611_v52 }
  0x5d   :  { %239 = vmatpush1.msra.mxu0 %v2574_v40  ;;  %1788 = vmatprep.subr.mxu1 %v3290_v0 }
  0x5e   :  { %240 = vmatprep.subr.mxu0 %v2580_v42  ;;  %1789 = vmatpush3.msra.mxu1 %v2621_v55 }
  0x5f   :  { %241 = vmatpush1.msra.mxu0 %v2584_v43  ;;  %1790 = vmatprep.subr.mxu1 %v3290_v0 }
  0x60   :  { %275 = vmatmul.mubr.f32.vlgmr.msra.gmra.mxu0 %v106_v44  ;;  %351 = vmatprep.subr.mxu0 %v2591_v46 }
  0x61   :  { %352 = vmatpush1.msra.mxu0 %v2595_v47  ;;  %1791 = vmatpush3.msra.mxu1 %v2631_v58 }
  0x62   :  { %353 = vmatprep.subr.mxu0 %v2599_v48  ;;  %1792 = vmatprep.subr.mxu1 %v3290_v0 }
  0x63   :  { %354 = vmatpush1.msra.mxu0 %v2605_v50  ;;  %1793 = vmatpush3.msra.mxu1 %v2641_v61 }
  0x64   :  { %355 = vmatprep.subr.mxu0 %v2608_v51  ;;  %415 = vmatprep.mubr.f32.mxu0 %v3290_v0  ;;  %v2698_v51 = vld [vmem:[#allocation8 + $0x118] sm:$0xff] }
  0x65   :  { %356 = vmatpush1.msra.mxu0 %v2614_v53  ;;  %1797 = vmatprep.subr.mxu1 %v3290_v0  ;;  %v2678_v53 = vld [vmem:[#allocation8 + $0x148] sm:$0xff]  ;;  %3326 = vst [vmem:[#allocation52_spill] sm:$0xff] %v2698_v51 }
  0x66   :  { %357 = vmatprep.subr.mxu0 %v2618_v54  ;;  %1795 = vmatmul.mubr.f32.vlgmr.msra.gmra.mxu1 %v106_v44  ;;  %v2668_v54 = vld [vmem:[#allocation8 + $0x160] sm:$0xff]  ;;  %3320 = vst [vmem:[#allocation46_spill] sm:$0xff] %v2678_v53 }
  0x67   :  { %358 = vmatpush1.msra.mxu0 %v2624_v56  ;;  %v2656_v56 = vld [vmem:[#allocation8 + $0xc8] sm:$0xff]  ;;  %3317 = vst [vmem:[#allocation43_spill] sm:$0xff] %v2668_v54  ;;  %v2685_v44 = vld [vmem:[#allocation8 + $0x80] sm:$0xff]  ;;  %1829 = vmatprep.mubr.msk.f32.mxu1 %vm2377_vm0, %v3290_v0 }
  0x68   :  { %359 = vmatprep.subr.mxu0 %v2628_v57  ;;  %3313 = vst [vmem:[#allocation39_spill] sm:$0xff] %v2656_v56  ;;  %v2659_v57 = vld [vmem:[#allocation8 + $0x178] sm:$0xff]  ;;  %3322 = vst [vmem:[#allocation48_spill] sm:$0xff] %v2685_v44 }
  0x69   :  { %360 = vmatpush1.msra.mxu0 %v2634_v59  ;;  %3314 = vst [vmem:[#allocation40_spill] sm:$0xff] %v2659_v57  ;;  %v2662_v59 = vld [vmem:[#allocation8 + $0xc0] sm:$0xff]  ;;  %1798 = vmatpush3.msra.mxu1 %v2659_v57 }
  0x6a   :  { %361 = vmatprep.subr.mxu0 %v2638_v60  ;;  %3315 = vst [vmem:[#allocation41_spill] sm:$0xff] %v2662_v59  ;;  %v2666_v60 = vld [vmem:[#allocation8 + $0xb0] sm:$0xff]  ;;  %1799 = vmatprep.subr.mxu1 %v3290_v0 }
  0x6b   :  { %362 = vmatpush1.msra.mxu0 %v2644_v62  ;;  %3316 = vst [vmem:[#allocation42_spill] sm:$0xff] %v2666_v60  ;;  %v2671_v62 = vld [vmem:[#allocation8 + $0xa8] sm:$0xff]  ;;  %1800 = vmatpush3.msra.mxu1 %v2668_v54 }
  0x6c   :  { %363 = vmatprep.subr.mxu0 %v2648_v63  ;;  %3318 = vst [vmem:[#allocation44_spill] sm:$0xff] %v2671_v62  ;;  %v2675_v63 = vld [vmem:[#allocation8 + $0x98] sm:$0xff]  ;;  %1801 = vmatprep.subr.mxu1 %v3290_v0 }
  0x6d   :  { %364 = vmatpush1.msra.mxu0 %v2652_v39  ;;  %3319 = vst [vmem:[#allocation45_spill] sm:$0xff] %v2675_v63  ;;  %v2681_v39 = vld [vmem:[#allocation8 + $0x90] sm:$0xff]  ;;  %1802 = vmatpush3.msra.mxu1 %v2678_v53  ;;  %v2708_v53 = vld [vmem:[#allocation8 + $0x100] sm:$0xff] }
  0x6e   :  { %365 = vmatprep.subr.mxu0 %v2656_v56  ;;  %3321 = vst [vmem:[#allocation47_spill] sm:$0xff] %v2681_v39  ;;  %v2688_v56 = vld [vmem:[#allocation8 + $0x130] sm:$0xff]  ;;  %1803 = vmatprep.subr.mxu1 %v3290_v0  ;;  %3329 = vst [vmem:[#allocation55_spill] sm:$0xff] %v2708_v53 }
  0x6f   :  { %366 = vmatpush1.msra.mxu0 %v2662_v59  ;;  %3323 = vst [vmem:[#allocation49_spill] sm:$0xff] %v2688_v56  ;;  %v2691_v59 = vld [vmem:[#allocation8 + $0x78] sm:$0xff]  ;;  %1804 = vmatpush3.msra.mxu1 %v2688_v56  ;;  %v2718_v56 = vld [vmem:[#allocation8 + $0xe8] sm:$0xff] }
  0x70   :  { %367 = vmatprep.subr.mxu0 %v2666_v60  ;;  %3324 = vst [vmem:[#allocation50_spill] sm:$0xff] %v2691_v59  ;;  %v2695_v60 = vld [vmem:[#allocation8 + $0x68] sm:$0xff]  ;;  %1805 = vmatprep.subr.mxu1 %v3290_v0  ;;  %3332 = vst [vmem:[#allocation58_spill] sm:$0xff] %v2718_v56 }
  0x71   :  { %368 = vmatpush1.msra.mxu0 %v2671_v62  ;;  %3325 = vst [vmem:[#allocation51_spill] sm:$0xff] %v2695_v60  ;;  %v2701_v62 = vld [vmem:[#allocation8 + $0x60] sm:$0xff]  ;;  %1806 = vmatpush3.msra.mxu1 %v2698_v51  ;;  %v2728_v51 = vld [vmem:[#allocation8 + $0xd0] sm:$0xff] }
  0x72   :  { %369 = vmatprep.subr.mxu0 %v2675_v63  ;;  %3327 = vst [vmem:[#allocation53_spill] sm:$0xff] %v2701_v62  ;;  %v2705_v63 = vld [vmem:[#allocation8 + $0x50] sm:$0xff]  ;;  %1807 = vmatprep.subr.mxu1 %v3290_v0  ;;  %3335 = vst [vmem:[#allocation61_spill] sm:$0xff] %v2728_v51 }
  0x73   :  { %370 = vmatpush1.msra.mxu0 %v2681_v39  ;;  %3328 = vst [vmem:[#allocation54_spill] sm:$0xff] %v2705_v63  ;;  %v2711_v39 = vld [vmem:[#allocation8 + $0x48] sm:$0xff]  ;;  %1808 = vmatpush3.msra.mxu1 %v2708_v53  ;;  %v2738_v53 = vld [vmem:[#allocation8 + $0xb8] sm:$0xff] }
  0x74   :  { %371 = vmatprep.subr.mxu0 %v2685_v44  ;;  %3330 = vst [vmem:[#allocation56_spill] sm:$0xff] %v2711_v39  ;;  %v2715_v44 = vld [vmem:[#allocation8 + $0x38] sm:$0xff]  ;;  %1809 = vmatprep.subr.mxu1 %v3290_v0  ;;  %3338 = vst [vmem:[#allocation64_spill] sm:$0xff] %v2738_v53 }
  0x75   :  { %372 = vmatpush1.msra.mxu0 %v2691_v59  ;;  %3331 = vst [vmem:[#allocation57_spill] sm:$0xff] %v2715_v44  ;;  %v2721_v59 = vld [vmem:[#allocation8 + $0x30] sm:$0xff]  ;;  %1810 = vmatpush3.msra.mxu1 %v2718_v56  ;;  %v2748_v56 = vld [vmem:[#allocation8 + $0xa0] sm:$0xff] }
  0x76   :  { %373 = vmatprep.subr.mxu0 %v2695_v60  ;;  %3333 = vst [vmem:[#allocation59_spill] sm:$0xff] %v2721_v59  ;;  %v2725_v60 = vld [vmem:[#allocation8 + $0x20] sm:$0xff]  ;;  %1811 = vmatprep.subr.mxu1 %v3290_v0  ;;  %3340 = vst [vmem:[#allocation66_spill] sm:$0xff] %v2748_v56 }
  0x77   :  { %374 = vmatpush1.msra.mxu0 %v2701_v62  ;;  %3334 = vst [vmem:[#allocation60_spill] sm:$0xff] %v2725_v60  ;;  %v2731_v62 = vld [vmem:[#allocation8 + $0x18] sm:$0xff]  ;;  %1812 = vmatpush3.msra.mxu1 %v2728_v51 }
  0x78   :  { %375 = vmatprep.subr.mxu0 %v2705_v63  ;;  %3336 = vst [vmem:[#allocation62_spill] sm:$0xff] %v2731_v62  ;;  %v2735_v63 = vld [vmem:[#allocation8 + $0x8] sm:$0xff]  ;;  %1813 = vmatprep.subr.mxu1 %v3290_v0 }
  0x79   :  { %376 = vmatpush1.msra.mxu0 %v2711_v39  ;;  %3337 = vst [vmem:[#allocation63_spill] sm:$0xff] %v2735_v63  ;;  %v2741_v39 = vld [vmem:[#allocation8] sm:$0xff]  ;;  %1814 = vmatpush3.msra.mxu1 %v2738_v53 }
  0x7a   :  { %377 = vmatprep.subr.mxu0 %v2715_v44  ;;  %3339 = vst [vmem:[#allocation65_spill] sm:$0xff] %v2741_v39  ;;  %v2745_v44 = vld [vmem:[#allocation5] sm:$0xff]  ;;  %1815 = vmatprep.subr.mxu1 %v3290_v0 }
  0x7b   :  { %378 = vmatpush1.msra.mxu0 %v2721_v59  ;;  %1816 = vmatpush3.msra.mxu1 %v2748_v56 }
  0x7c   :  { %379 = vmatprep.subr.mxu0 %v2725_v60  ;;  %v2754_v60 = vld [vmem:[#allocation8 + $0x88] sm:$0xff]  ;;  %1817 = vmatprep.subr.mxu1 %v3290_v0 }
  0x7d   :  { %380 = vmatpush1.msra.mxu0 %v2731_v62  ;;  %3341 = vst [vmem:[#allocation67_spill] sm:$0xff] %v2754_v60  ;;  %v2759_v62 = vld [vmem:[#allocation8 + $0x70] sm:$0xff]  ;;  %1818 = vmatpush3.msra.mxu1 %v2754_v60 }
  0x7e   :  { %381 = vmatprep.subr.mxu0 %v2735_v63  ;;  %3342 = vst [vmem:[#allocation68_spill] sm:$0xff] %v2759_v62  ;;  %1819 = vmatprep.subr.mxu1 %v3290_v0  ;;  %v2772_v63 = vld [vmem:[#allocation8 + $0x40] sm:$0xff] }
  0x7f   :  { %382 = vmatpush1.msra.mxu0 %v2741_v39  ;;  %v2766_v39 = vld [vmem:[#allocation8 + $0x58] sm:$0xff]  ;;  %1820 = vmatpush3.msra.mxu1 %v2759_v62  ;;  %3344 = vst [vmem:[#allocation70_spill] sm:$0xff] %v2772_v63 }
  0x80   :  { %416 = vmatmul.mubr.f32.vlgmr.msra.gmra.mxu0 %v2745_v44  ;;  %540 = vmatprep.subr.mxu0 %v2454_v1  ;;  %3343 = vst [vmem:[#allocation69_spill] sm:$0xff] %v2766_v39  ;;  %v2778_v1 = vld [vmem:[#allocation8 + $0x28] sm:$0xff] }
  0x81   :  { %541 = vmatpush1.msra.mxu0 %v2456_v2  ;;  %1821 = vmatprep.subr.mxu1 %v3290_v0  ;;  %3345 = vst [vmem:[#allocation71_spill] sm:$0xff] %v2778_v1 }
  0x82   :  { %542 = vmatprep.subr.mxu0 %v2458_v3  ;;  %1822 = vmatpush3.msra.mxu1 %v2766_v39  ;;  %v2784_v3 = vld [vmem:[#allocation8 + $0x10] sm:$0xff] }
  0x83   :  { %543 = vmatpush1.msra.mxu0 %v2461_v4  ;;  %1823 = vmatprep.subr.mxu1 %v3290_v0  ;;  %3346 = vst [vmem:[#allocation72_spill] sm:$0xff] %v2784_v3 }
  0x84   :  { %544 = vmatprep.subr.mxu0 %v2464_v5  ;;  %1824 = vmatpush3.msra.mxu1 %v2772_v63 }
  0x85   :  { %545 = vmatpush1.msra.mxu0 %v2467_v6  ;;  %1825 = vmatprep.subr.mxu1 %v3290_v0 }
  0x86   :  { %546 = vmatprep.subr.mxu0 %v2470_v7  ;;  %1826 = vmatpush3.msra.mxu1 %v2778_v1 }
  0x87   :  { %547 = vmatpush1.msra.mxu0 %v2473_v8  ;;  %1827 = vmatprep.subr.mxu1 %v3290_v0 }
  0x88   :  { %548 = vmatprep.subr.mxu0 %v2476_v9  ;;  %1828 = vmatpush3.msra.mxu1 %v2784_v3 }
  0x89   :  { %549 = vmatpush1.msra.mxu0 %v2479_v10  ;;  %1830 = vmatmul.mubr.f32.vlgmr.msra.gmra.mxu1 %v2745_v44 }
  0x8a   :  { %550 = vmatprep.subr.mxu0 %v2482_v11  ;;  %1832 = vmatprep.subr.mxu1 %v3290_v0 }
  0x8b   :  { %1833 = vmatpush3.msra.mxu1 %v2493_v15  ;;  %551 = vmatpush1.msra.mxu0 %v2485_v12 }
  0x8c   :  { %1834 = vmatprep.subr.mxu1 %v3290_v0  ;;  %552 = vmatprep.subr.mxu0 %v2488_v13 }
  0x8d   :  { %1835 = vmatpush3.msra.mxu1 %v2499_v17  ;;  %553 = vmatpush1.msra.mxu0 %v2491_v14 }
  0x8e   :  { %1836 = vmatprep.subr.mxu1 %v3290_v0  ;;  %554 = vmatprep.subr.mxu0 %v2496_v16 }
  0x8f   :  { %1837 = vmatpush3.msra.mxu1 %v2505_v19  ;;  %555 = vmatpush1.msra.mxu0 %v2502_v18 }
  0x90   :  { %1838 = vmatprep.subr.mxu1 %v3290_v0  ;;  %556 = vmatprep.subr.mxu0 %v2508_v20 }
  0x91   :  { %1839 = vmatpush3.msra.mxu1 %v2515_v22  ;;  %557 = vmatpush1.msra.mxu0 %v2512_v21 }
  0x92   :  { %1840 = vmatprep.subr.mxu1 %v3290_v0  ;;  %558 = vmatprep.subr.mxu0 %v2518_v23 }
  0x93   :  { %1841 = vmatpush3.msra.mxu1 %v2525_v25  ;;  %559 = vmatpush1.msra.mxu0 %v2522_v24 }
  0x94   :  { %1842 = vmatprep.subr.mxu1 %v3290_v0  ;;  %560 = vmatprep.subr.mxu0 %v2528_v26 }
  0x95   :  { %1843 = vmatpush3.msra.mxu1 %v2535_v28  ;;  %561 = vmatpush1.msra.mxu0 %v2532_v27 }
  0x96   :  { %1844 = vmatprep.subr.mxu1 %v3290_v0  ;;  %562 = vmatprep.subr.mxu0 %v2538_v29 }
  0x97   :  { %1845 = vmatpush3.msra.mxu1 %v2545_v31  ;;  %563 = vmatpush1.msra.mxu0 %v2542_v30 }
  0x98   :  { %1846 = vmatprep.subr.mxu1 %v3290_v0  ;;  %564 = vmatprep.subr.mxu0 %v2548_v32 }
  0x99   :  { %1847 = vmatpush3.msra.mxu1 %v2555_v34  ;;  %565 = vmatpush1.msra.mxu0 %v2552_v33 }
  0x9a   :  { %1848 = vmatprep.subr.mxu1 %v3290_v0  ;;  %566 = vmatprep.subr.mxu0 %v2558_v35 }
  0x9b   :  { %1849 = vmatpush3.msra.mxu1 %v2565_v37  ;;  %567 = vmatpush1.msra.mxu0 %v2562_v36 }
  0x9c   :  { %1850 = vmatprep.subr.mxu1 %v3290_v0  ;;  %568 = vmatprep.subr.mxu0 %v2568_v38 }
  0x9d   :  { %1851 = vmatpush3.msra.mxu1 %v2577_v41  ;;  %569 = vmatpush1.msra.mxu0 %v2574_v40 }
  0x9e   :  { %1852 = vmatprep.subr.mxu1 %v3290_v0  ;;  %570 = vmatprep.subr.mxu0 %v2580_v42 }
  0x9f   :  { %1853 = vmatpush3.msra.mxu1 %v2588_v45  ;;  %571 = vmatpush1.msra.mxu0 %v2584_v43  ;;  %v103_v43 = vld [vmem:[#allocation2 + $0x8] sm:$0xff] }
  0xa0   :  { %1854 = vmatprep.subr.mxu1 %v3290_v0  ;;  %604 = vmatprep.mubr.f32.mxu0 %v3290_v0  ;;  %v107_v42 = vmax.f32 %v103_v43, 0.0  ;;  %v3349_v43 = vld [vmem:[#allocation46_spill] sm:$0xff] }
  0xa1   :  { %1855 = vmatpush3.msra.mxu1 %v2602_v49  ;;  %1864 = vmatprep.mubr.msk.f32.mxu1 %vm2377_vm0, %v3290_v0 }
  0xa2   :  { %1856 = vmatprep.subr.mxu1 %v3290_v0  ;;  %681 = vmatprep.subr.mxu0 %v2591_v46  ;;  %v3347_v46 = vld [vmem:[#allocation27_spill] sm:$0xff] }
  0xa3   :  { %1857 = vmatpush3.msra.mxu1 %v2611_v52  ;;  %605 = vmatmul.mubr.f32.vlgmr.msra.gmra.mxu0 %v107_v42 }
  0xa4   :  { %1858 = vmatprep.subr.mxu1 %v3290_v0  ;;  %682 = vmatpush1.msra.mxu0 %v2595_v47  ;;  %v3353_v47 = vld [vmem:[#allocation31_spill] sm:$0xff] }
  0xa5   :  { %1859 = vmatpush3.msra.mxu1 %v2621_v55  ;;  %683 = vmatprep.subr.mxu0 %v2599_v48  ;;  %v3352_v48 = vld [vmem:[#allocation49_spill] sm:$0xff] }
  0xa6   :  { %1860 = vmatprep.subr.mxu1 %v3290_v0  ;;  %684 = vmatpush1.msra.mxu0 %v2605_v50  ;;  %v3356_v50 = vld [vmem:[#allocation34_spill] sm:$0xff] }
  0xa7   :  { %1861 = vmatpush3.msra.mxu1 %v2631_v58  ;;  %685 = vmatprep.subr.mxu0 %v3347_v46  ;;  %v3355_v46 = vld [vmem:[#allocation52_spill] sm:$0xff] }
  0xa8   :  { %1862 = vmatprep.subr.mxu1 %v3290_v0  ;;  %745 = vmatprep.mubr.f32.mxu0 %v3290_v0 }
  0xa9   :  { %1863 = vmatpush3.msra.mxu1 %v2641_v61  ;;  %v3348_v61 = vld [vmem:[#allocation28_spill] sm:$0xff] }
  0xaa   :  { %1867 = vmatprep.subr.mxu1 %v3290_v0  ;;  %1865 = vmatmul.mubr.f32.vlgmr.msra.gmra.mxu1 %v107_v42  ;;  %v3350_v42 = vld [vmem:[#allocation29_spill] sm:$0xff] }
  0xab   :  { %1868 = vmatpush3.msra.mxu1 %v2659_v57  ;;  %686 = vmatpush1.msra.mxu0 %v3348_v61  ;;  %v3351_v57 = vld [vmem:[#allocation30_spill] sm:$0xff]  ;;  %v3359_v61 = vld [vmem:[#allocation37_spill] sm:$0xff] }
  0xac   :  { %1869 = vmatprep.subr.mxu1 %v3290_v0  ;;  %687 = vmatprep.subr.mxu0 %v3350_v42  ;;  %v3358_v42 = vld [vmem:[#allocation55_spill] sm:$0xff] }
  0xad   :  { %1870 = vmatpush3.msra.mxu1 %v2668_v54  ;;  %688 = vmatpush1.msra.mxu0 %v3351_v57  ;;  %v3354_v54 = vld [vmem:[#allocation33_spill] sm:$0xff]  ;;  %v3362_v57 = vld [vmem:[#allocation39_spill] sm:$0xff] }
  0xae   :  { %1871 = vmatprep.subr.mxu1 %v3290_v0  ;;  %689 = vmatprep.subr.mxu0 %v3353_v47  ;;  %v3361_v47 = vld [vmem:[#allocation58_spill] sm:$0xff] }
  0xaf   :  { %1872 = vmatpush3.msra.mxu1 %v3349_v43  ;;  %690 = vmatpush1.msra.mxu0 %v3354_v54  ;;  %v3357_v43 = vld [vmem:[#allocation36_spill] sm:$0xff] }
  0xb0   :  { %1873 = vmatprep.subr.mxu1 %v3290_v0  ;;  %691 = vmatprep.subr.mxu0 %v3356_v50  ;;  %v3364_v50 = vld [vmem:[#allocation42_spill] sm:$0xff] }
  0xb1   :  { %1874 = vmatpush3.msra.mxu1 %v3352_v48  ;;  %692 = vmatpush1.msra.mxu0 %v3357_v43  ;;  %v3360_v48 = vld [vmem:[#allocation38_spill] sm:$0xff] }
  0xb2   :  { %1875 = vmatprep.subr.mxu1 %v3290_v0  ;;  %693 = vmatprep.subr.mxu0 %v3359_v61  ;;  %v3366_v61 = vld [vmem:[#allocation45_spill] sm:$0xff] }
  0xb3   :  { %1876 = vmatpush3.msra.mxu1 %v3355_v46  ;;  %694 = vmatpush1.msra.mxu0 %v3360_v48  ;;  %v3363_v46 = vld [vmem:[#allocation41_spill] sm:$0xff] }
  0xb4   :  { %1877 = vmatprep.subr.mxu1 %v3290_v0  ;;  %695 = vmatprep.subr.mxu0 %v3362_v57  ;;  %v3368_v57 = vld [vmem:[#allocation48_spill] sm:$0xff] }
  0xb5   :  { %1878 = vmatpush3.msra.mxu1 %v3358_v42  ;;  %696 = vmatpush1.msra.mxu0 %v3363_v46  ;;  %v3365_v42 = vld [vmem:[#allocation44_spill] sm:$0xff] }
  0xb6   :  { %1879 = vmatprep.subr.mxu1 %v3290_v0  ;;  %697 = vmatprep.subr.mxu0 %v3364_v50  ;;  %v3370_v50 = vld [vmem:[#allocation51_spill] sm:$0xff] }
  0xb7   :  { %1880 = vmatpush3.msra.mxu1 %v3361_v47  ;;  %698 = vmatpush1.msra.mxu0 %v3365_v42  ;;  %v3367_v47 = vld [vmem:[#allocation47_spill] sm:$0xff] }
  0xb8   :  { %1881 = vmatprep.subr.mxu1 %v3290_v0  ;;  %699 = vmatprep.subr.mxu0 %v3366_v61  ;;  %v3372_v61 = vld [vmem:[#allocation54_spill] sm:$0xff] }
  0xb9   :  { %1882 = vmatpush3.msra.mxu1 %v2728_v51  ;;  %700 = vmatpush1.msra.mxu0 %v3367_v47  ;;  %v3369_v51 = vld [vmem:[#allocation50_spill] sm:$0xff] }
  0xba   :  { %1883 = vmatprep.subr.mxu1 %v3290_v0  ;;  %701 = vmatprep.subr.mxu0 %v3368_v57  ;;  %v3374_v57 = vld [vmem:[#allocation57_spill] sm:$0xff] }
  0xbb   :  { %1884 = vmatpush3.msra.mxu1 %v2738_v53  ;;  %702 = vmatpush1.msra.mxu0 %v3369_v51  ;;  %v3371_v53 = vld [vmem:[#allocation53_spill] sm:$0xff] }
  0xbc   :  { %1885 = vmatprep.subr.mxu1 %v3290_v0  ;;  %703 = vmatprep.subr.mxu0 %v3370_v50  ;;  %v3375_v50 = vld [vmem:[#allocation60_spill] sm:$0xff] }
  0xbd   :  { %1886 = vmatpush3.msra.mxu1 %v2748_v56  ;;  %704 = vmatpush1.msra.mxu0 %v3371_v53  ;;  %v3373_v56 = vld [vmem:[#allocation56_spill] sm:$0xff] }
  0xbe   :  { %1887 = vmatprep.subr.mxu1 %v3290_v0  ;;  %705 = vmatprep.subr.mxu0 %v3372_v61  ;;  %v3377_v61 = vld [vmem:[#allocation63_spill] sm:$0xff] }
  0xbf   :  { %1888 = vmatpush3.msra.mxu1 %v2754_v60  ;;  %706 = vmatpush1.msra.mxu0 %v3373_v56 }
  0xc0   :  { %1889 = vmatprep.subr.mxu1 %v3290_v0  ;;  %707 = vmatprep.subr.mxu0 %v3374_v57 }
  0xc1   :  { %1890 = vmatpush3.msra.mxu1 %v2759_v62  ;;  %708 = vmatpush1.msra.mxu0 %v2721_v59  ;;  %v3376_v62 = vld [vmem:[#allocation62_spill] sm:$0xff] }
  0xc2   :  { %1891 = vmatprep.subr.mxu1 %v3290_v0  ;;  %709 = vmatprep.subr.mxu0 %v3375_v50  ;;  %v3379_v50 = vld [vmem:[#allocation19_spill] sm:$0xff] }
  0xc3   :  { %1892 = vmatpush3.msra.mxu1 %v2766_v39  ;;  %710 = vmatpush1.msra.mxu0 %v3376_v62  ;;  %v3378_v39 = vld [vmem:[#allocation65_spill] sm:$0xff] }
  0xc4   :  { %1893 = vmatprep.subr.mxu1 %v3290_v0  ;;  %711 = vmatprep.subr.mxu0 %v3377_v61 }
  0xc5   :  { %1894 = vmatpush3.msra.mxu1 %v2772_v63  ;;  %712 = vmatpush1.msra.mxu0 %v3378_v39  ;;  %v206_v39 = vld [vmem:[%s3189_s4] sm:$0x3] }
  0xc6   :  { %1895 = vmatprep.subr.mxu1 %v3290_v0  ;;  %1899 = vmatprep.mubr.msk.f32.mxu1 %vm2377_vm0, %v3290_v0 }
  0xc7   :  { %1896 = vmatpush3.msra.mxu1 %v2778_v1  ;;  %847 = vmatprep.subr.mxu0 %v3379_v50  ;;  %v495_v1 = vlaneseq }
  0xc8   :  { %1897 = vmatprep.subr.mxu1 %v3290_v0 }
  0xc9   :  { %1898 = vmatpush3.msra.mxu1 %v2784_v3  ;;  %v496_v59 = vshrl.u32 %v495_v1, 7 }
  0xca   :  { %1902 = vmatprep.subr.mxu1 %v3290_v0 }
  0xcb   :  { %v497_v57 = vsub.s32 0, %v496_v59  ;;  %v501_v51 = vsub.s32 1, %v496_v59 }
  0xcd   :  { %v2922_v53 = vrot.slane %v206_v39, %v497_v57 }
 0x120   :  { %v276_v61 = vpop.f32.mrf.mxu0 }
 0x122   :  { %v278_v56 = vpop.f32.mrf.mxu0 }
 0x126   :  { %v347_v62 = vpop.f32.mrf.mxu1 }
 0x128   :  { %v1796_v63 = vpop.f32.mrf.mxu1 }
 0x129   :  { %v2925_v63 = vrot.slane %v206_v39, %v501_v51 }
 0x140   :  { %v417_v3 = vpop.f32.mrf.mxu0 }
 0x141   :  { %v492_v60 = vadd.f32 %v417_v3, %v276_v61  ;;  %v2931_v3 = vld [vmem:[%s3191_s6] ss:$0 sm:$0xff] }
 0x142   :  { %v419_v47 = vpop.f32.mrf.mxu0 }
 0x143   :  { %v505_v50 = vadd.f32 %v2922_v53, %v492_v60  ;;  %v493_v42 = vadd.f32 %v419_v47, %v278_v56 }
 0x145   :  { %v1598_v0 = vmul.f32 -1.442695, %v505_v50  ;;  %v506_v1 = vadd.f32 %v2925_v63, %v493_v42  ;;  %v3421_v50 = vld [vmem:[#allocation68_spill] sm:$0xff] }
 0x147   :  { %2090 = vpow2.f32 %v1598_v0  ;;  %v1599_v46 = vmul.f32 -1.442695, %v506_v1  ;;  %v2937_v0 = vld [vmem:[%s3190_s5] ss:$0 sm:$0xff]  ;;  %v3422_v1 = vld [vmem:[#allocation54_spill] sm:$0xff] }
 0x149   :  { %v488_v48 = vpop.f32.mrf.mxu1  ;;  %2092 = vpow2.f32 %v1599_v46  ;;  %v525_v46 = vadd.f32 %v2937_v0, %v347_v62  ;;  %v3381_v62 = vmov 0.0  }
 0x14a   :  { %v532_v47 = vadd.f32 %v2931_v3, %v488_v48  ;;  %v3380_v48 = vld [vmem:[#allocation20_spill] sm:$0xff] }
 0x14b   :  { %v1831_v43 = vpop.f32.mrf.mxu1 }
 0x154   :  { %v2091_v54 = vpop.eup %2090 }
 0x155   :  { %v513_v57 = vadd.f32 1.0, %v2091_v54 }
 0x156   :  { %v2093_v58 = vpop.eup %2092 }
 0x157   :  { %2094 = vrcp.f32 %v513_v57  ;;  %v514_v59 = vadd.f32 1.0, %v2093_v58  ;;  %v3423_v57 = vld [vmem:[#allocation56_spill] sm:$0xff] }
 0x159   :  { %2096 = vrcp.f32 %v514_v59  ;;  %v3424_v59 = vld [vmem:[#allocation69_spill] sm:$0xff] }
 0x164   :  { %v2095_v51 = vpop.eup %2094 }
 0x165   :  { %v533_v54 = vmul.f32 %v2095_v51, %v532_v47  ;;  %v3425_v47 = vld [vmem:[#allocation57_spill] sm:$0xff]  ;;  %v3426_v51 = vld [vmem:[#allocation59_spill] sm:$0xff] }
 0x166   :  { %v2097_v60 = vpop.eup %2096 }
 0x167   :  { %v534_v56 = vadd.f32 %v533_v54, %v525_v46  ;;  %v536_v61 = vsub.f32 1.0, %v2097_v60  ;;  %v538_v58 = vmul.f32 %v2097_v60, %v2745_v44  ;;  %v3420_v44 = vld [vmem:[#allocation53_spill] sm:$0xff]  ;;  %v3427_v46 = vld [vmem:[#allocation70_spill] sm:$0xff]  ;;  %v3428_v54 = vld [vmem:[#allocation60_spill] sm:$0xff] }
 0x168   :  { %v3430_v60 = vld [vmem:[#allocation71_spill] sm:$0xff] }
 0x169   :  { %2098 = vtanh.f32 %v534_v56  ;;  %v3429_v56 = vld [vmem:[#allocation62_spill] sm:$0xff] }
 0x176   :  { %v2099_v39 = vpop.eup %2098 }
 0x177   :  { %v537_v43 = vmul.f32 %v2099_v39, %v536_v61  ;;  %v3431_v61 = vld [vmem:[#allocation63_spill] sm:$0xff]  ;;  %v3432_v39 = vld [vmem:[#allocation65_spill] sm:$0xff] }
 0x179   :  { %v2941_v42 = vadd.f32 %v538_v58, %v537_v43  ;;  %v3433_v43 = vld [vmem:[#allocation72_spill] sm:$0xff]  ;;  %v2134_v58 = vld [vmem:[#allocation7 + $0x170] sm:$0xff] }
 0x17b   :  { %746 = vmatmul.mubr.f32.vlgmr.msra.gmra.mxu0 %v2941_v42  ;;  %1900 = vmatmul.mubr.f32.vlgmr.msra.gmra.mxu1 %v2941_v42 }
 0x17c   :  { %848 = vmatpush1.msra.mxu0 %v2456_v2  ;;  %1903 = vmatpush3.msra.mxu1 %v2493_v15  ;;  %v3382_v2 = vld [vmem:[#allocation32_spill] sm:$0xff]  ;;  %v3390_v15 = vld [vmem:[#allocation26_spill] sm:$0xff] }
 0x17d   :  { %849 = vmatprep.subr.mxu0 %v3380_v48  ;;  %1904 = vmatprep.subr.mxu1 %v3381_v62  ;;  %v606_v48 = vpop.f32.mrf.mxu0 }
 0x17e   :  { %850 = vmatpush1.msra.mxu0 %v2461_v4  ;;  %1905 = vmatpush3.msra.mxu1 %v2499_v17  ;;  %v3383_v4 = vld [vmem:[#allocation21_spill] sm:$0xff]  ;;  %v3392_v17 = vld [vmem:[#allocation27_spill] sm:$0xff] }
 0x17f   :  { %851 = vmatprep.subr.mxu0 %v2464_v5  ;;  %1906 = vmatprep.subr.mxu1 %v3381_v62  ;;  %v3005_v5 = vpop.f32.mrf.mxu1 }
 0x180   :  { %852 = vmatpush1.msra.mxu0 %v2467_v6  ;;  %1907 = vmatpush3.msra.mxu1 %v2505_v19  ;;  %v3384_v6 = vld [vmem:[#allocation22_spill] sm:$0xff] }
 0x181   :  { %853 = vmatprep.subr.mxu0 %v2470_v7  ;;  %1908 = vmatprep.subr.mxu1 %v3381_v62  ;;  %v3385_v7 = vld [vmem:[#allocation35_spill] sm:$0xff]  ;;  %v3394_v19 = vld [vmem:[#allocation46_spill] sm:$0xff] }
 0x182   :  { %854 = vmatpush1.msra.mxu0 %v2473_v8  ;;  %1909 = vmatpush3.msra.mxu1 %v2515_v22  ;;  %v1866_v8 = vpop.f32.mrf.mxu1  ;;  %v3397_v22 = vld [vmem:[#allocation49_spill] sm:$0xff] }
 0x183   :  { %855 = vmatprep.subr.mxu0 %v2476_v9  ;;  %1910 = vmatprep.subr.mxu1 %v3381_v62  ;;  %v3386_v9 = vld [vmem:[#allocation23_spill] sm:$0xff] }
 0x184   :  { %856 = vmatpush1.msra.mxu0 %v2479_v10  ;;  %1911 = vmatpush3.msra.mxu1 %v2525_v25  ;;  %v104_v10 = vld [vmem:[#allocation2 + $0x10] sm:$0xff]  ;;  %v3400_v25 = vld [vmem:[#allocation52_spill] sm:$0xff] }
 0x185   :  { %857 = vmatprep.subr.mxu0 %v2482_v11  ;;  %1912 = vmatprep.subr.mxu1 %v3381_v62  ;;  %v108_v11 = vmax.f32 %v104_v10, 0.0 }
 0x186   :  { %858 = vmatpush1.msra.mxu0 %v2485_v12  ;;  %1913 = vmatpush3.msra.mxu1 %v2535_v28  ;;  %v3387_v12 = vld [vmem:[#allocation24_spill] sm:$0xff]  ;;  %v3403_v28 = vld [vmem:[#allocation55_spill] sm:$0xff] }
 0x187   :  { %859 = vmatprep.subr.mxu0 %v2488_v13  ;;  %1914 = vmatprep.subr.mxu1 %v3381_v62  ;;  %v3388_v13 = vld [vmem:[#allocation40_spill] sm:$0xff] }
 0x188   :  { %860 = vmatpush1.msra.mxu0 %v2491_v14  ;;  %1915 = vmatpush3.msra.mxu1 %v2545_v31  ;;  %v3389_v14 = vld [vmem:[#allocation25_spill] sm:$0xff]  ;;  %v3406_v31 = vld [vmem:[#allocation58_spill] sm:$0xff] }
 0x189   :  { %861 = vmatprep.subr.mxu0 %v2496_v16  ;;  %1916 = vmatprep.subr.mxu1 %v3381_v62  ;;  %v3391_v16 = vld [vmem:[#allocation43_spill] sm:$0xff] }
 0x18a   :  { %862 = vmatpush1.msra.mxu0 %v2502_v18  ;;  %1917 = vmatpush3.msra.mxu1 %v2555_v34  ;;  %v3393_v18 = vld [vmem:[#allocation28_spill] sm:$0xff]  ;;  %v3409_v34 = vld [vmem:[#allocation61_spill] sm:$0xff] }
 0x18b   :  { %863 = vmatprep.subr.mxu0 %v2508_v20  ;;  %1918 = vmatprep.subr.mxu1 %v3381_v62  ;;  %v3395_v20 = vld [vmem:[#allocation29_spill] sm:$0xff] }
 0x18c   :  { %864 = vmatpush1.msra.mxu0 %v2512_v21  ;;  %1919 = vmatpush3.msra.mxu1 %v2565_v37  ;;  %v3396_v21 = vld [vmem:[#allocation30_spill] sm:$0xff]  ;;  %v3412_v37 = vld [vmem:[#allocation64_spill] sm:$0xff] }
 0x18d   :  { %865 = vmatprep.subr.mxu0 %v2518_v23  ;;  %1920 = vmatprep.subr.mxu1 %v3381_v62  ;;  %v3398_v23 = vld [vmem:[#allocation31_spill] sm:$0xff] }
 0x18e   :  { %866 = vmatpush1.msra.mxu0 %v2522_v24  ;;  %1921 = vmatpush3.msra.mxu1 %v2577_v41  ;;  %v3399_v24 = vld [vmem:[#allocation33_spill] sm:$0xff]  ;;  %v3415_v41 = vld [vmem:[#allocation66_spill] sm:$0xff] }
 0x18f   :  { %867 = vmatprep.subr.mxu0 %v2528_v26  ;;  %1922 = vmatprep.subr.mxu1 %v3381_v62  ;;  %v3401_v26 = vld [vmem:[#allocation34_spill] sm:$0xff] }
 0x190   :  { %868 = vmatpush1.msra.mxu0 %v2532_v27  ;;  %1923 = vmatpush3.msra.mxu1 %v2588_v45  ;;  %v3402_v27 = vld [vmem:[#allocation36_spill] sm:$0xff] }
 0x191   :  { %869 = vmatprep.subr.mxu0 %v2538_v29  ;;  %1924 = vmatprep.subr.mxu1 %v3381_v62  ;;  %v3404_v29 = vld [vmem:[#allocation37_spill] sm:$0xff]  ;;  %v3416_v45 = vld [vmem:[#allocation48_spill] sm:$0xff] }
 0x192   :  { %870 = vmatpush1.msra.mxu0 %v2542_v30  ;;  %1925 = vmatpush3.msra.mxu1 %v2602_v49  ;;  %v3405_v30 = vld [vmem:[#allocation38_spill] sm:$0xff] }
 0x193   :  { %871 = vmatprep.subr.mxu0 %v2548_v32  ;;  %1926 = vmatprep.subr.mxu1 %v3381_v62  ;;  %v3407_v32 = vld [vmem:[#allocation39_spill] sm:$0xff]  ;;  %v3417_v49 = vld [vmem:[#allocation50_spill] sm:$0xff] }
 0x194   :  { %872 = vmatpush1.msra.mxu0 %v2552_v33  ;;  %1927 = vmatpush3.msra.mxu1 %v2611_v52  ;;  %v3408_v33 = vld [vmem:[#allocation41_spill] sm:$0xff]  ;;  %v3418_v52 = vld [vmem:[#allocation67_spill] sm:$0xff] }
 0x195   :  { %873 = vmatprep.subr.mxu0 %v2558_v35  ;;  %1928 = vmatprep.subr.mxu1 %v3381_v62  ;;  %v3410_v35 = vld [vmem:[#allocation42_spill] sm:$0xff] }
 0x196   :  { %874 = vmatpush1.msra.mxu0 %v2562_v36  ;;  %1929 = vmatpush3.msra.mxu1 %v2621_v55  ;;  %v3411_v36 = vld [vmem:[#allocation44_spill] sm:$0xff]  ;;  %v3419_v55 = vld [vmem:[#allocation51_spill] sm:$0xff] }
 0x197   :  { %875 = vmatprep.subr.mxu0 %v2568_v38  ;;  %1930 = vmatprep.subr.mxu1 %v3381_v62  ;;  %v3413_v38 = vld [vmem:[#allocation45_spill] sm:$0xff] }
 0x198   :  { %876 = vmatpush1.msra.mxu0 %v2574_v40  ;;  %1931 = vmatpush3.msra.mxu1 %v3382_v2  ;;  %v3414_v40 = vld [vmem:[#allocation47_spill] sm:$0xff]  ;;  %v608_v2 = vpop.f32.mrf.mxu0 }
 0x199   :  { %877 = vmatprep.subr.mxu0 %v3383_v4  ;;  %911 = vmatprep.mubr.f32.mxu0 %v3381_v62 }
 0x19a   :  { %878 = vmatpush1.msra.mxu0 %v3384_v6  ;;  %1932 = vmatprep.subr.mxu1 %v3381_v62 }
 0x19b   :  { %1933 = vmatpush3.msra.mxu1 %v3385_v7  ;;  %1934 = vmatprep.mubr.msk.f32.mxu1 %vm2377_vm0, %v3381_v62 }
 0x19c   :  { %988 = vmatprep.subr.mxu0 %v3386_v9  ;;  %1937 = vmatprep.subr.mxu1 %v3381_v62 }
 0x19d   :  { %912 = vmatmul.mubr.f32.vlgmr.msra.gmra.mxu0 %v108_v11  ;;  %1935 = vmatmul.mubr.f32.vlgmr.msra.gmra.mxu1 %v108_v11 }
 0x19e   :  { %989 = vmatpush1.msra.mxu0 %v3387_v12  ;;  %1938 = vmatpush3.msra.mxu1 %v3388_v13 }
 0x19f   :  { %990 = vmatprep.subr.mxu0 %v3389_v14  ;;  %1939 = vmatprep.subr.mxu1 %v3381_v62 }
 0x1a0   :  { %991 = vmatpush1.msra.mxu0 %v3390_v15  ;;  %1940 = vmatpush3.msra.mxu1 %v3391_v16 }
 0x1a1   :  { %992 = vmatprep.subr.mxu0 %v3392_v17  ;;  %1941 = vmatprep.subr.mxu1 %v3381_v62 }
 0x1a2   :  { %993 = vmatpush1.msra.mxu0 %v3393_v18  ;;  %1942 = vmatpush3.msra.mxu1 %v3394_v19 }
 0x1a3   :  { %994 = vmatprep.subr.mxu0 %v3395_v20  ;;  %1943 = vmatprep.subr.mxu1 %v3381_v62 }
 0x1a4   :  { %995 = vmatpush1.msra.mxu0 %v3396_v21  ;;  %1944 = vmatpush3.msra.mxu1 %v3397_v22  ;;  %v838_v21 = vadd.f32 %v2937_v0, %v3005_v5  ;;  %v2137_v5 = vld [vmem:[#allocation7 + $0x158] sm:$0xff] }
 0x1a5   :  { %996 = vmatprep.subr.mxu0 %v3398_v23  ;;  %1945 = vmatprep.subr.mxu1 %v3381_v62 }
 0x1a6   :  { %997 = vmatpush1.msra.mxu0 %v3399_v24  ;;  %1946 = vmatpush3.msra.mxu1 %v3400_v25 }
 0x1a7   :  { %998 = vmatprep.subr.mxu0 %v3401_v26  ;;  %1947 = vmatprep.subr.mxu1 %v3381_v62 }
 0x1a8   :  { %999 = vmatpush1.msra.mxu0 %v3402_v27  ;;  %1948 = vmatpush3.msra.mxu1 %v3403_v28 }
 0x1a9   :  { %1000 = vmatprep.subr.mxu0 %v3404_v29  ;;  %1949 = vmatprep.subr.mxu1 %v3381_v62 }
 0x1aa   :  { %1001 = vmatpush1.msra.mxu0 %v3405_v30  ;;  %1950 = vmatpush3.msra.mxu1 %v3406_v31 }
 0x1ab   :  { %1002 = vmatprep.subr.mxu0 %v3407_v32  ;;  %1951 = vmatprep.subr.mxu1 %v3381_v62 }
 0x1ac   :  { %1003 = vmatpush1.msra.mxu0 %v3408_v33  ;;  %1952 = vmatpush3.msra.mxu1 %v3409_v34 }
 0x1ad   :  { %1004 = vmatprep.subr.mxu0 %v3410_v35  ;;  %1953 = vmatprep.subr.mxu1 %v3381_v62  ;;  %v2135_v35 = vld [vmem:[#allocation7 + $0x168] sm:$0xff] }
 0x1ae   :  { %1005 = vmatpush1.msra.mxu0 %v3411_v36  ;;  %1954 = vmatpush3.msra.mxu1 %v3412_v37  ;;  %v2136_v36 = vld [vmem:[#allocation7 + $0x178] sm:$0xff] }
 0x1af   :  { %1006 = vmatprep.subr.mxu0 %v3413_v38  ;;  %1955 = vmatprep.subr.mxu1 %v3381_v62  ;;  %v2138_v38 = vld [vmem:[#allocation7 + $0x150] sm:$0xff] }
 0x1b0   :  { %1007 = vmatpush1.msra.mxu0 %v3414_v40  ;;  %1956 = vmatpush3.msra.mxu1 %v3415_v41  ;;  %v2139_v40 = vld [vmem:[#allocation7 + $0x160] sm:$0xff] }
 0x1b1   :  { %1008 = vmatprep.subr.mxu0 %v3416_v45  ;;  %1957 = vmatprep.subr.mxu1 %v3381_v62  ;;  %v2140_v45 = vld [vmem:[#allocation7 + $0x140] sm:$0xff] }
 0x1b2   :  { %1009 = vmatpush1.msra.mxu0 %v3417_v49  ;;  %1958 = vmatpush3.msra.mxu1 %v3418_v52  ;;  %v2141_v49 = vld [vmem:[#allocation7 + $0x138] sm:$0xff] }
 0x1b3   :  { %1010 = vmatprep.subr.mxu0 %v3419_v55  ;;  %1959 = vmatprep.subr.mxu1 %v3381_v62  ;;  %v2142_v55 = vld [vmem:[#allocation7 + $0x148] sm:$0xff] }
 0x1b4   :  { %1011 = vmatpush1.msra.mxu0 %v3420_v44  ;;  %1960 = vmatpush3.msra.mxu1 %v3421_v50  ;;  %v2143_v44 = vld [vmem:[#allocation7 + $0x128] sm:$0xff] }
 0x1b5   :  { %1012 = vmatprep.subr.mxu0 %v3422_v1  ;;  %1961 = vmatprep.subr.mxu1 %v3381_v62  ;;  %v2144_v1 = vld [vmem:[#allocation7 + $0x120] sm:$0xff] }
 0x1b6   :  { %1013 = vmatpush1.msra.mxu0 %v3423_v57  ;;  %1962 = vmatpush3.msra.mxu1 %v3424_v59  ;;  %v2145_v57 = vld [vmem:[#allocation7 + $0x130] sm:$0xff] }
 0x1b7   :  { %1014 = vmatprep.subr.mxu0 %v3425_v47  ;;  %1963 = vmatprep.subr.mxu1 %v3381_v62  ;;  %v2146_v47 = vld [vmem:[#allocation7 + $0x110] sm:$0xff] }
 0x1b8   :  { %1015 = vmatpush1.msra.mxu0 %v3426_v51  ;;  %1964 = vmatpush3.msra.mxu1 %v3427_v46  ;;  %v2147_v51 = vld [vmem:[#allocation7 + $0x108] sm:$0xff] }
 0x1b9   :  { %1016 = vmatprep.subr.mxu0 %v3428_v54  ;;  %1965 = vmatprep.subr.mxu1 %v3381_v62  ;;  %v2148_v54 = vld [vmem:[#allocation7 + $0x118] sm:$0xff] }
 0x1ba   :  { %1017 = vmatpush1.msra.mxu0 %v3429_v56  ;;  %1966 = vmatpush3.msra.mxu1 %v3430_v60  ;;  %v2149_v56 = vld [vmem:[#allocation7 + $0xf8] sm:$0xff] }
 0x1bb   :  { %1018 = vmatprep.subr.mxu0 %v3431_v61  ;;  %1967 = vmatprep.subr.mxu1 %v3381_v62  ;;  %v2150_v61 = vld [vmem:[#allocation7 + $0xf0] sm:$0xff] }
 0x1bc   :  { %1019 = vmatpush1.msra.mxu0 %v3432_v39  ;;  %1052 = vmatprep.mubr.f32.mxu0 %v3381_v62  ;;  %v2151_v39 = vld [vmem:[#allocation7 + $0x100] sm:$0xff] }
 0x1bd   :  { %1968 = vmatpush3.msra.mxu1 %v3433_v43  ;;  %1969 = vmatprep.mubr.msk.f32.mxu1 %vm2377_vm0, %v3381_v62 }
 0x1be   :  { %1154 = vmatprep.subr.mxu0 %v2134_v58  ;;  %1972 = vmatprep.subr.mxu1 %v3381_v62  ;;  %v2152_v58 = vld [vmem:[#allocation7 + $0xe0] sm:$0xff] }
 0x23b   :  { %v747_v4 = vpop.f32.mrf.mxu0  ;;  %v818_v6 = vpop.f32.mrf.mxu1 }
 0x23c   :  { %v822_v7 = vadd.f32 %v747_v4, %v606_v48  ;;  %v839_v19 = vadd.f32 %v2931_v3, %v818_v6  ;;  %v2153_v48 = vld [vmem:[#allocation7 + $0xd8] sm:$0xff]  ;;  %v2155_v4 = vld [vmem:[#allocation7 + $0xc8] sm:$0xff]  ;;  %v2156_v6 = vld [vmem:[#allocation7 + $0xc0] sm:$0xff] }
 0x23d   :  { %v749_v8 = vpop.f32.mrf.mxu0  ;;  %v1901_v9 = vpop.f32.mrf.mxu1 }
 0x23e   :  { %v824_v10 = vadd.f32 %v822_v7, %v2922_v53  ;;  %v823_v12 = vadd.f32 %v749_v8, %v608_v2  ;;  %v2154_v2 = vld [vmem:[#allocation7 + $0xe8] sm:$0xff]  ;;  %v2157_v7 = vld [vmem:[#allocation7 + $0xd0] sm:$0xff] }
 0x23f   :  { %v2158_v8 = vld [vmem:[#allocation7 + $0xb0] sm:$0xff]  ;;  %v2159_v9 = vld [vmem:[#allocation7 + $0xa8] sm:$0xff] }
 0x240   :  { %v1602_v11 = vmul.f32 -1.442695, %v824_v10  ;;  %v825_v13 = vadd.f32 %v823_v12, %v2925_v63  ;;  %v2160_v10 = vld [vmem:[#allocation7 + $0xb8] sm:$0xff]  ;;  %v2162_v12 = vld [vmem:[#allocation7 + $0x90] sm:$0xff] }
 0x242   :  { %2100 = vpow2.f32 %v1602_v11  ;;  %v1603_v14 = vmul.f32 -1.442695, %v825_v13  ;;  %v2161_v11 = vld [vmem:[#allocation7 + $0x98] sm:$0xff]  ;;  %v2163_v13 = vld [vmem:[#allocation7 + $0xa0] sm:$0xff] }
 0x244   :  { %2102 = vpow2.f32 %v1603_v14  ;;  %v2164_v14 = vld [vmem:[#allocation7 + $0x80] sm:$0xff] }
 0x24f   :  { %v2101_v15 = vpop.eup %2100 }
 0x250   :  { %v832_v16 = vadd.f32 1.0, %v2101_v15  ;;  %v2165_v15 = vld [vmem:[#allocation7 + $0x78] sm:$0xff] }
 0x251   :  { %v2103_v17 = vpop.eup %2102 }
 0x252   :  { %2104 = vrcp.f32 %v832_v16  ;;  %v833_v18 = vadd.f32 1.0, %v2103_v17  ;;  %v2166_v16 = vld [vmem:[#allocation7 + $0x88] sm:$0xff] }
 0x253   :  { %v2167_v17 = vld [vmem:[#allocation7 + $0x68] sm:$0xff] }
 0x254   :  { %2106 = vrcp.f32 %v833_v18  ;;  %v2168_v18 = vld [vmem:[#allocation7 + $0x60] sm:$0xff] }
 0x25f   :  { %v2105_v20 = vpop.eup %2104 }
 0x260   :  { %v840_v23 = vmul.f32 %v2105_v20, %v839_v19  ;;  %v2169_v19 = vld [vmem:[#allocation7 + $0x70] sm:$0xff] }
 0x261   :  { %v2107_v26 = vpop.eup %2106  ;;  %v2170_v20 = vld [vmem:[#allocation7 + $0x50] sm:$0xff] }
 0x262   :  { %v841_v24 = vadd.f32 %v840_v23, %v838_v21  ;;  %v843_v27 = vsub.f32 1.0, %v2107_v26  ;;  %v845_v32 = vmul.f32 %v2107_v26, %v2941_v42  ;;  %v2171_v21 = vld [vmem:[#allocation7 + $0x48] sm:$0xff]  ;;  %v2172_v23 = vld [vmem:[#allocation7 + $0x58] sm:$0xff]  ;;  %v2174_v26 = vld [vmem:[#allocation7 + $0x30] sm:$0xff] }
 0x264   :  { %2108 = vtanh.f32 %v841_v24  ;;  %v2173_v24 = vld [vmem:[#allocation7 + $0x38] sm:$0xff] }
 0x271   :  { %v2109_v29 = vpop.eup %2108 }
 0x272   :  { %v844_v30 = vmul.f32 %v2109_v29, %v843_v27  ;;  %v2175_v27 = vld [vmem:[#allocation7 + $0x40] sm:$0xff] }
 0x273   :  { %v2176_v29 = vld [vmem:[#allocation7 + $0x20] sm:$0xff] }
 0x274   :  { %v3086_v33 = vadd.f32 %v845_v32, %v844_v30  ;;  %v2177_v30 = vld [vmem:[#allocation7 + $0x18] sm:$0xff]  ;;  %v2178_v32 = vld [vmem:[#allocation7 + $0x8] sm:$0xff] }
 0x276   :  { %1053 = vmatmul.mubr.f32.vlgmr.msra.gmra.mxu0 %v3086_v33  ;;  %1970 = vmatmul.mubr.f32.vlgmr.msra.gmra.mxu1 %v3086_v33 }
 0x277   :  { %1155 = vmatpush1.msra.mxu0 %v2135_v35  ;;  %1973 = vmatpush3.msra.mxu1 %v2136_v36  ;;  %v2179_v35 = vld [vmem:[#allocation7 + $0x28] sm:$0xff]  ;;  %v3105_v36 = vpop.f32.mrf.mxu1 }
 0x278   :  { %1156 = vmatprep.subr.mxu0 %v2137_v5  ;;  %1974 = vmatprep.subr.mxu1 %v3381_v62  ;;  %v2180_v5 = vld [vmem:[#allocation7] sm:$0xff] }
 0x279   :  { %1157 = vmatpush1.msra.mxu0 %v2138_v38  ;;  %1975 = vmatpush3.msra.mxu1 %v2139_v40  ;;  %v2181_v38 = vld [vmem:[#allocation7 + $0x10] sm:$0xff] }
 0x27a   :  { %1158 = vmatprep.subr.mxu0 %v2140_v45  ;;  %1976 = vmatprep.subr.mxu1 %v3381_v62  ;;  %v2182_v40 = vld [vmem:[#allocation8 + $0x170] sm:$0xff]  ;;  %v1936_v45 = vpop.f32.mrf.mxu1 }
 0x27b   :  { %1159 = vmatpush1.msra.mxu0 %v2141_v49  ;;  %1977 = vmatpush3.msra.mxu1 %v2142_v55  ;;  %v105_v49 = vld [vmem:[#allocation2 + $0x18] sm:$0xff] }
 0x27c   :  { %1160 = vmatprep.subr.mxu0 %v2143_v44  ;;  %1978 = vmatprep.subr.mxu1 %v3381_v62  ;;  %v109_v55 = vmax.f32 %v105_v49, 0.0  ;;  %v2183_v44 = vld [vmem:[#allocation8 + $0x168] sm:$0xff] }
 0x27d   :  { %1161 = vmatpush1.msra.mxu0 %v2144_v1  ;;  %1979 = vmatpush3.msra.mxu1 %v2145_v57  ;;  %v2184_v1 = vld [vmem:[#allocation8 + $0x178] sm:$0xff] }
 0x27e   :  { %1162 = vmatprep.subr.mxu0 %v2146_v47  ;;  %1980 = vmatprep.subr.mxu1 %v3381_v62  ;;  %v2185_v57 = vld [vmem:[#allocation8 + $0x158] sm:$0xff]  ;;  %v2186_v47 = vld [vmem:[#allocation8 + $0x150] sm:$0xff] }
 0x27f   :  { %1163 = vmatpush1.msra.mxu0 %v2147_v51  ;;  %1981 = vmatpush3.msra.mxu1 %v2148_v54  ;;  %v2187_v51 = vld [vmem:[#allocation8 + $0x160] sm:$0xff] }
 0x280   :  { %1164 = vmatprep.subr.mxu0 %v2149_v56  ;;  %1982 = vmatprep.subr.mxu1 %v3381_v62  ;;  %v2188_v54 = vld [vmem:[#allocation8 + $0x140] sm:$0xff]  ;;  %v2189_v56 = vld [vmem:[#allocation8 + $0x138] sm:$0xff] }
 0x281   :  { %1165 = vmatpush1.msra.mxu0 %v2150_v61  ;;  %1983 = vmatpush3.msra.mxu1 %v2151_v39  ;;  %v2190_v61 = vld [vmem:[#allocation8 + $0x148] sm:$0xff] }
 0x282   :  { %1166 = vmatprep.subr.mxu0 %v2152_v58  ;;  %1984 = vmatprep.subr.mxu1 %v3381_v62  ;;  %v2191_v39 = vld [vmem:[#allocation8 + $0x128] sm:$0xff]  ;;  %v2192_v58 = vld [vmem:[#allocation8 + $0x120] sm:$0xff] }
 0x283   :  { %1167 = vmatpush1.msra.mxu0 %v2153_v48  ;;  %1985 = vmatpush3.msra.mxu1 %v2154_v2  ;;  %v2193_v48 = vld [vmem:[#allocation8 + $0x110] sm:$0xff]  ;;  %v2194_v2 = vld [vmem:[#allocation8 + $0x108] sm:$0xff] }
 0x284   :  { %1168 = vmatprep.subr.mxu0 %v2155_v4  ;;  %1986 = vmatprep.subr.mxu1 %v3381_v62  ;;  %v2195_v4 = vld [vmem:[#allocation8 + $0xf8] sm:$0xff] }
 0x285   :  { %1169 = vmatpush1.msra.mxu0 %v2156_v6  ;;  %1987 = vmatpush3.msra.mxu1 %v2157_v7  ;;  %v2196_v6 = vld [vmem:[#allocation8 + $0xf0] sm:$0xff]  ;;  %v2197_v7 = vld [vmem:[#allocation8 + $0xe0] sm:$0xff] }
 0x286   :  { %1170 = vmatprep.subr.mxu0 %v2158_v8  ;;  %1988 = vmatprep.subr.mxu1 %v3381_v62  ;;  %v2199_v8 = vld [vmem:[#allocation8 + $0xc8] sm:$0xff] }
 0x287   :  { %1171 = vmatpush1.msra.mxu0 %v2159_v9  ;;  %1989 = vmatpush3.msra.mxu1 %v2160_v10  ;;  %v2201_v9 = vld [vmem:[#allocation8 + $0xb0] sm:$0xff]  ;;  %v2203_v10 = vld [vmem:[#allocation8 + $0x98] sm:$0xff] }
 0x288   :  { %1172 = vmatprep.subr.mxu0 %v2161_v11  ;;  %1990 = vmatprep.subr.mxu1 %v3381_v62  ;;  %v2205_v11 = vld [vmem:[#allocation8 + $0x80] sm:$0xff] }
 0x289   :  { %1173 = vmatpush1.msra.mxu0 %v2162_v12  ;;  %1991 = vmatpush3.msra.mxu1 %v2163_v13  ;;  %v2207_v12 = vld [vmem:[#allocation8 + $0x68] sm:$0xff]  ;;  %v2209_v13 = vld [vmem:[#allocation8 + $0x50] sm:$0xff] }
 0x28a   :  { %1174 = vmatprep.subr.mxu0 %v2164_v14  ;;  %1992 = vmatprep.subr.mxu1 %v3381_v62  ;;  %v2211_v14 = vld [vmem:[#allocation8 + $0x38] sm:$0xff] }
 0x28b   :  { %1175 = vmatpush1.msra.mxu0 %v2165_v15  ;;  %1993 = vmatpush3.msra.mxu1 %v2166_v16  ;;  %v2213_v15 = vld [vmem:[#allocation8 + $0x20] sm:$0xff]  ;;  %v2215_v16 = vld [vmem:[#allocation8 + $0x8] sm:$0xff] }
 0x28c   :  { %1176 = vmatprep.subr.mxu0 %v2167_v17  ;;  %1994 = vmatprep.subr.mxu1 %v3381_v62 }
 0x28d   :  { %1177 = vmatpush1.msra.mxu0 %v2168_v18  ;;  %1995 = vmatpush3.msra.mxu1 %v2169_v19 }
 0x28e   :  { %1178 = vmatprep.subr.mxu0 %v2170_v20  ;;  %1996 = vmatprep.subr.mxu1 %v3381_v62 }
 0x28f   :  { %1179 = vmatpush1.msra.mxu0 %v2171_v21  ;;  %1997 = vmatpush3.msra.mxu1 %v2172_v23 }
 0x290   :  { %1180 = vmatprep.subr.mxu0 %v2173_v24  ;;  %1998 = vmatprep.subr.mxu1 %v3381_v62 }
 0x291   :  { %1181 = vmatpush1.msra.mxu0 %v2174_v26  ;;  %1999 = vmatpush3.msra.mxu1 %v2175_v27 }
 0x292   :  { %1182 = vmatprep.subr.mxu0 %v2176_v29  ;;  %2000 = vmatprep.subr.mxu1 %v3381_v62 }
 0x293   :  { %1183 = vmatpush1.msra.mxu0 %v2177_v30  ;;  %1218 = vmatprep.mubr.f32.mxu0 %v3381_v62 }
 0x294   :  { %1184 = vmatprep.subr.mxu0 %v2178_v32  ;;  %2001 = vmatpush3.msra.mxu1 %v2179_v35 }
 0x295   :  { %1185 = vmatpush1.msra.mxu0 %v2180_v5  ;;  %2002 = vmatprep.subr.mxu1 %v3381_v62 }
 0x296   :  { %2003 = vmatpush3.msra.mxu1 %v2181_v38  ;;  %1295 = vmatprep.subr.mxu0 %v2182_v40  ;;  %v1145_v40 = vadd.f32 %v2937_v0, %v3105_v36  ;;  %v1475_v36 = vld [vmem:[#allocation10 + $0x68] sm:$0xff] }
 0x297   :  { %2004 = vmatprep.mubr.msk.f32.mxu1 %vm2377_vm0, %v3381_v62  ;;  %2007 = vmatprep.subr.mxu1 %v3381_v62 }
 0x298   :  { %1219 = vmatmul.mubr.f32.vlgmr.msra.gmra.mxu0 %v109_v55  ;;  %2005 = vmatmul.mubr.f32.vlgmr.msra.gmra.mxu1 %v109_v55 }
 0x299   :  { %1296 = vmatpush1.msra.mxu0 %v2183_v44  ;;  %2008 = vmatpush3.msra.mxu1 %v2184_v1 }
 0x29a   :  { %1297 = vmatprep.subr.mxu0 %v2185_v57  ;;  %2009 = vmatprep.subr.mxu1 %v3381_v62 }
 0x29b   :  { %1298 = vmatpush1.msra.mxu0 %v2186_v47  ;;  %2010 = vmatpush3.msra.mxu1 %v2187_v51 }
 0x29c   :  { %1299 = vmatprep.subr.mxu0 %v2188_v54  ;;  %2011 = vmatprep.subr.mxu1 %v3381_v62  ;;  %v1477_v54 = vld [vmem:[#allocation10 + $0x78] sm:$0xff] }
 0x29d   :  { %1300 = vmatpush1.msra.mxu0 %v2189_v56  ;;  %2012 = vmatpush3.msra.mxu1 %v2190_v61  ;;  %v1476_v56 = vld [vmem:[#allocation10 + $0x70] sm:$0xff]  ;;  %v1474_v61 = vld [vmem:[#allocation10 + $0x60] sm:$0xff] }
 0x29e   :  { %1301 = vmatprep.subr.mxu0 %v2191_v39  ;;  %2013 = vmatprep.subr.mxu1 %v3381_v62  ;;  %v1472_v39 = vld [vmem:[#allocation10 + $0x50] sm:$0xff] }
 0x29f   :  { %1302 = vmatpush1.msra.mxu0 %v2192_v58  ;;  %2014 = vmatpush3.msra.mxu1 %v3397_v22  ;;  %v2198_v22 = vld [vmem:[#allocation8 + $0xd8] sm:$0xff]  ;;  %v1471_v58 = vld [vmem:[#allocation10 + $0x48] sm:$0xff] }
 0x2a0   :  { %1303 = vmatprep.subr.mxu0 %v2193_v48  ;;  %2015 = vmatprep.subr.mxu1 %v3381_v62  ;;  %v1470_v48 = vld [vmem:[#allocation10 + $0x40] sm:$0xff] }
 0x2a1   :  { %1304 = vmatpush1.msra.mxu0 %v2194_v2  ;;  %2016 = vmatpush3.msra.mxu1 %v3400_v25  ;;  %v2200_v25 = vld [vmem:[#allocation8 + $0xc0] sm:$0xff]  ;;  %v1469_v2 = vld [vmem:[#allocation10 + $0x38] sm:$0xff] }
 0x2a2   :  { %1305 = vmatprep.subr.mxu0 %v2195_v4  ;;  %2017 = vmatprep.subr.mxu1 %v3381_v62  ;;  %v1468_v4 = vld [vmem:[#allocation10 + $0x30] sm:$0xff] }
 0x2a3   :  { %1306 = vmatpush1.msra.mxu0 %v2196_v6  ;;  %2018 = vmatpush3.msra.mxu1 %v3403_v28  ;;  %v2202_v28 = vld [vmem:[#allocation8 + $0xa8] sm:$0xff] }
 0x2a4   :  { %1307 = vmatprep.subr.mxu0 %v2197_v7  ;;  %2019 = vmatprep.subr.mxu1 %v3381_v62  ;;  %v1467_v6 = vld [vmem:[#allocation10 + $0x28] sm:$0xff]  ;;  %v1466_v7 = vld [vmem:[#allocation10 + $0x20] sm:$0xff] }
 0x2a5   :  { %1308 = vmatpush1.msra.mxu0 %v2198_v22  ;;  %2020 = vmatpush3.msra.mxu1 %v3406_v31  ;;  %v2204_v31 = vld [vmem:[#allocation8 + $0x90] sm:$0xff]  ;;  %v1465_v22 = vld [vmem:[#allocation10 + $0x18] sm:$0xff] }
 0x2a6   :  { %1309 = vmatprep.subr.mxu0 %v2199_v8  ;;  %2021 = vmatprep.subr.mxu1 %v3381_v62  ;;  %v1464_v8 = vld [vmem:[#allocation10 + $0x10] sm:$0xff] }
 0x2a7   :  { %1310 = vmatpush1.msra.mxu0 %v2200_v25  ;;  %2022 = vmatpush3.msra.mxu1 %v3409_v34  ;;  %v2206_v34 = vld [vmem:[#allocation8 + $0x78] sm:$0xff]  ;;  %v1463_v25 = vld [vmem:[#allocation10 + $0x8] sm:$0xff] }
 0x2a8   :  { %1311 = vmatprep.subr.mxu0 %v2201_v9  ;;  %2023 = vmatprep.subr.mxu1 %v3381_v62  ;;  %v1462_v9 = vld [vmem:[#allocation10] sm:$0xff] }
 0x2a9   :  { %1312 = vmatpush1.msra.mxu0 %v2202_v28  ;;  %2024 = vmatpush3.msra.mxu1 %v3412_v37  ;;  %v2208_v37 = vld [vmem:[#allocation8 + $0x60] sm:$0xff] }
 0x2aa   :  { %1313 = vmatprep.subr.mxu0 %v2203_v10  ;;  %2025 = vmatprep.subr.mxu1 %v3381_v62 }
 0x2ab   :  { %1314 = vmatpush1.msra.mxu0 %v2204_v31  ;;  %2026 = vmatpush3.msra.mxu1 %v3415_v41  ;;  %v2210_v41 = vld [vmem:[#allocation8 + $0x48] sm:$0xff] }
 0x2ac   :  { %1315 = vmatprep.subr.mxu0 %v2205_v11  ;;  %2027 = vmatprep.subr.mxu1 %v3381_v62 }
 0x2ad   :  { %1316 = vmatpush1.msra.mxu0 %v2206_v34  ;;  %2028 = vmatpush3.msra.mxu1 %v3418_v52  ;;  %v2212_v52 = vld [vmem:[#allocation8 + $0x30] sm:$0xff] }
 0x2ae   :  { %1317 = vmatprep.subr.mxu0 %v2207_v12  ;;  %2029 = vmatprep.subr.mxu1 %v3381_v62 }
 0x2af   :  { %1318 = vmatpush1.msra.mxu0 %v2208_v37  ;;  %2030 = vmatpush3.msra.mxu1 %v3421_v50  ;;  %v2214_v50 = vld [vmem:[#allocation8 + $0x18] sm:$0xff] }
 0x2b0   :  { %1319 = vmatprep.subr.mxu0 %v2209_v13  ;;  %2031 = vmatprep.subr.mxu1 %v3381_v62 }
 0x2b1   :  { %1320 = vmatpush1.msra.mxu0 %v2210_v41  ;;  %2032 = vmatpush3.msra.mxu1 %v3424_v59  ;;  %v2216_v59 = vld [vmem:[#allocation8] sm:$0xff] }
 0x2b2   :  { %1321 = vmatprep.subr.mxu0 %v2211_v14  ;;  %2033 = vmatprep.subr.mxu1 %v3381_v62 }
 0x2b3   :  { %1322 = vmatpush1.msra.mxu0 %v2212_v52  ;;  %2034 = vmatpush3.msra.mxu1 %v3427_v46  ;;  %v913_v46 = vpop.f32.mrf.mxu0 }
 0x2b4   :  { %1323 = vmatprep.subr.mxu0 %v2213_v15  ;;  %2035 = vmatprep.subr.mxu1 %v3381_v62 }
 0x2b5   :  { %1324 = vmatpush1.msra.mxu0 %v2214_v50  ;;  %2036 = vmatpush3.msra.mxu1 %v3430_v60  ;;  %v915_v17 = vpop.f32.mrf.mxu0 }
 0x2b6   :  { %1325 = vmatprep.subr.mxu0 %v2215_v16  ;;  %2037 = vmatprep.subr.mxu1 %v3381_v62 }
 0x2b7   :  { %1326 = vmatpush1.msra.mxu0 %v2216_v59  ;;  %1359 = vmatprep.mubr.f32.mxu0 %v3381_v62 }
 0x2b8   :  { %2038 = vmatpush3.msra.mxu1 %v3433_v43  ;;  %2039 = vmatprep.mubr.msk.f32.mxu1 %vm2377_vm0, %v3381_v62 }
 0x2b9   :  { %2042 = vmatprep.subr.mxu0 %v3381_v62 }
 0x336   :  { %v1054_v18 = vpop.f32.mrf.mxu0  ;;  %v1125_v19 = vpop.f32.mrf.mxu1 }
 0x337   :  { %v1129_v60 = vadd.f32 %v1054_v18, %v913_v46  ;;  %v1146_v5 = vadd.f32 %v2931_v3, %v1125_v19  ;;  %v1608_v46 = vld [vmem:[%s3193_s8] ss:$0 sm:$0xff]  ;;  %s2378_s8 = smov [#allocation12]  }
 0x338   :  { %v1056_v20 = vpop.f32.mrf.mxu0  ;;  %v1971_v21 = vpop.f32.mrf.mxu1  ;;  %s1583_s22 = sshll.u32 %s2378_s8, 4  ;;  %s1584_s22 = int_to_ptr.vmem [resolvable:$true] %s1583_s22 }
 0x339   :  { %v1131_v23 = vadd.f32 %v1129_v60, %v2922_v53  ;;  %v1130_v26 = vadd.f32 %v1056_v20, %v915_v17  ;;  %s2317_s23 = scalar_lea.vmem %s1584_s22, 128  ;;  %p2322_p12 = scmp.lt.s32.totalorder %s1584_s22, %s1584_s22 }
 0x33a   :  { %p2318_p11 = scmp.ne.s32.totalorder %s1584_s22, %s2317_s23  ;;  %p2323_p13 = scmp.lt.s32.totalorder %s2317_s23, %s2317_s23 }
 0x33b   :  { %v1604_v24 = vmul.f32 -1.442695, %v1131_v23  ;;  %v1132_v27 = vadd.f32 %v1130_v26, %v2925_v63 }
 0x33c   :  { %p2324_p0 = por %p2323_p13, %p2322_p12 }
 0x33d   :  { %2110 = vpow2.f32 %v1604_v24  ;;  %v1605_v43 = vmul.f32 -1.442695, %v1132_v27 }
 0x33e   :  { %p2325_p1 = pnand %p2324_p0, %p2318_p11 }
 0x33f   :  { %2112 = vpow2.f32 %v1605_v43 }
 0x34a   :  { %v2111_v29 = vpop.eup %2110 }
 0x34b   :  { %v1139_v30 = vadd.f32 1.0, %v2111_v29 }
 0x34c   :  { %v2113_v32 = vpop.eup %2112 }
 0x34d   :  { %2114 = vrcp.f32 %v1139_v30  ;;  %v1140_v35 = vadd.f32 1.0, %v2113_v32 }
 0x34f   :  { %2116 = vrcp.f32 %v1140_v35 }
 0x358   :  { %v1291_v28 = vpop.f32.mrf.mxu1  ;;  %v1220_v31 = vpop.f32.mrf.mxu0 }
 0x35a   :  { %v2115_v38 = vpop.eup %2114  ;;  %v2006_v10 = vpop.f32.mrf.mxu1 }
 0x35b   :  { %v1147_v45 = vmul.f32 %v2115_v38, %v1146_v5  ;;  %v1222_v11 = vpop.f32.mrf.mxu0 }
 0x35c   :  { %v2117_v55 = vpop.eup %2116 }
 0x35d   :  { %v1148_v49 = vadd.f32 %v1147_v45, %v1145_v40  ;;  %v1150_v44 = vsub.f32 1.0, %v2117_v55  ;;  %v1152_v47 = vmul.f32 %v2117_v55, %v3086_v33  ;;  %v1473_v33 = vld [vmem:[#allocation10 + $0x58] sm:$0xff] }
 0x35f   :  { %2118 = vtanh.f32 %v1148_v49 }
 0x36c   :  { %v2119_v1 = vpop.eup %2118 }
 0x36d   :  { %v1151_v57 = vmul.f32 %v2119_v1, %v1150_v44 }
 0x36f   :  { %v3149_v51 = vadd.f32 %v1152_v47, %v1151_v57 }
 0x371   :  { %1360 = vmatmul.mubr.f32.vlgmr.msra.gmra.mxu0 %v3149_v51  ;;  %2040 = vmatmul.mubr.f32.vlgmr.msra.gmra.mxu1 %v3149_v51 }
 0x372   :  { %2043 = vmatpush3.msra.mxu0 %v1477_v54  ;;  %2074 = vmatprep.mubr.msk.f32.mxu0 %vm2377_vm0, %v3381_v62 }
 0x373   :  { %2044 = vmatprep.subr.mxu0 %v3381_v62 }
 0x374   :  { %2045 = vmatpush3.msra.mxu0 %v1476_v56 }
 0x375   :  { %2046 = vmatprep.subr.mxu0 %v3381_v62 }
 0x376   :  { %2047 = vmatpush3.msra.mxu0 %v1475_v36 }
 0x377   :  { %2048 = vmatprep.subr.mxu0 %v3381_v62 }
 0x378   :  { %2049 = vmatpush3.msra.mxu0 %v1474_v61 }
 0x379   :  { %2050 = vmatprep.subr.mxu0 %v3381_v62 }
 0x37a   :  { %2051 = vmatpush3.msra.mxu0 %v1473_v33 }
 0x37b   :  { %2052 = vmatprep.subr.mxu0 %v3381_v62 }
 0x37c   :  { %2053 = vmatpush3.msra.mxu0 %v1472_v39 }
 0x37d   :  { %2054 = vmatprep.subr.mxu0 %v3381_v62 }
 0x37e   :  { %2055 = vmatpush3.msra.mxu0 %v1471_v58 }
 0x37f   :  { %2056 = vmatprep.subr.mxu0 %v3381_v62 }
 0x380   :  { %2057 = vmatpush3.msra.mxu0 %v1470_v48 }
 0x381   :  { %2058 = vmatprep.subr.mxu0 %v3381_v62 }
 0x382   :  { %2059 = vmatpush3.msra.mxu0 %v1469_v2 }
 0x383   :  { %2060 = vmatprep.subr.mxu0 %v3381_v62 }
 0x384   :  { %2061 = vmatpush3.msra.mxu0 %v1468_v4 }
 0x385   :  { %2062 = vmatprep.subr.mxu0 %v3381_v62 }
 0x386   :  { %2063 = vmatpush3.msra.mxu0 %v1467_v6 }
 0x387   :  { %2064 = vmatprep.subr.mxu0 %v3381_v62 }
 0x388   :  { %2065 = vmatpush3.msra.mxu0 %v1466_v7 }
 0x389   :  { %2066 = vmatprep.subr.mxu0 %v3381_v62 }
 0x38a   :  { %2067 = vmatpush3.msra.mxu0 %v1465_v22 }
 0x38b   :  { %2068 = vmatprep.subr.mxu0 %v3381_v62 }
 0x38c   :  { %2069 = vmatpush3.msra.mxu0 %v1464_v8 }
 0x38d   :  { %2070 = vmatprep.subr.mxu0 %v3381_v62 }
 0x38e   :  { %2071 = vmatpush3.msra.mxu0 %v1463_v25 }
 0x38f   :  { %2072 = vmatprep.subr.mxu0 %v3381_v62 }
 0x390   :  { %2073 = vmatpush3.msra.mxu0 %v1462_v9 }
 0x391   :  { %2075 = vmatmul.mubr.f32.vlgmr.msra.gmra.mxu0 %v2941_v42 }
 0x431   :  { %v1361_v34 = vpop.f32.mrf.mxu0  ;;  %v1432_v12 = vpop.f32.mrf.mxu1 }
 0x432   :  { %v1436_v37 = vadd.f32 %v1361_v34, %v1220_v31  ;;  %v1453_v20 = vadd.f32 %v2931_v3, %v1432_v12 }
 0x433   :  { %v1363_v13 = vpop.f32.mrf.mxu0  ;;  %v2041_v41 = vpop.f32.mrf.mxu1 }
 0x434   :  { %v1438_v14 = vadd.f32 %v1436_v37, %v2922_v53  ;;  %v1437_v15 = vadd.f32 %v1363_v13, %v1222_v11  ;;  %v1452_v53 = vadd.f32 %v2937_v0, %v1291_v28 }
 0x436   :  { %v1606_v52 = vmul.f32 -1.442695, %v1438_v14  ;;  %v1439_v50 = vadd.f32 %v1437_v15, %v2925_v63 }
 0x438   :  { %2120 = vpow2.f32 %v1606_v52  ;;  %v1607_v62 = vmul.f32 -1.442695, %v1439_v50 }
 0x43a   :  { %2122 = vpow2.f32 %v1607_v62 }
 0x445   :  { %v2121_v16 = vpop.eup %2120 }
 0x446   :  { %v1446_v59 = vadd.f32 1.0, %v2121_v16 }
 0x447   :  { %v2123_v42 = vpop.eup %2122 }
 0x448   :  { %2124 = vrcp.f32 %v1446_v59  ;;  %v1447_v18 = vadd.f32 1.0, %v2123_v42 }
 0x44a   :  { %2126 = vrcp.f32 %v1447_v18 }
 0x451   :  { %v1551_v17 = vpop.f32.mrf.mxu0 }
 0x452   :  { %v1552_v19 = vadd.f32 %v1608_v46, %v1551_v17 }
 0x453   :  { %v2076_v60 = vpop.f32.mrf.mxu0 }
 0x454   :  { %1555 = vmax.xlane.f32.xlu0 %v1552_v19 }
 0x455   :  { %v2125_v63 = vpop.eup %2124 }
 0x456   :  { %v1454_v21 = vmul.f32 %v2125_v63, %v1453_v20 }
 0x457   :  { %v2127_v24 = vpop.eup %2126 }
 0x458   :  { %v1455_v23 = vadd.f32 %v1454_v21, %v1452_v53  ;;  %v1457_v26 = vsub.f32 1.0, %v2127_v24  ;;  %v1459_v29 = vmul.f32 %v2127_v24, %v3149_v51 }
 0x45a   :  { %2128 = vtanh.f32 %v1455_v23 }
 0x467   :  { %v2129_v27 = vpop.eup %2128 }
 0x468   :  { %v1458_v43 = vmul.f32 %v2129_v27, %v1457_v26 }
 0x46a   :  { %v1460_v30 = vadd.f32 %v1459_v29, %v1458_v43 }
 0x46c   :  { %1461 = vst [vmem:[#allocation12] sm:$0xff] %v1460_v30 }
 0x4dd   :  { %v1556_v32 = vpop.xlane.xlu0 %1555 }
 0x4de   :  { %v1557_v35 = vsub.f32 %v1552_v19, %v1556_v32 }
 0x4e0   :  { %v1558_v5 = vmul.f32 1.442695, %v1557_v35 }
 0x4e2   :  { %2130 = vpow2.f32 %v1558_v5 }
 0x4ef   :  { %v2131_v0 = vpop.eup %2130 }
 0x4f0   :  { %1560 = vadd.xlane.f32.xlu0 %v2131_v0 }
 0x4f1   :  { %2328 = shalt.err (!%p2325_p1)
}
 0x4f2   :  { %1586 = dma.vmem_to_hbm [thread:$0]  %s1584_s22, 128, %s3195_s10, [#allocation13]  }
 0x4f3   :  { %s2379_s26 = smov [#allocation11]  }
 0x4f4   :  { %s1573_s1 = sshll.u32 %s2379_s26, 4  ;;  %s1574_s1 = int_to_ptr.vmem [resolvable:$true] %s1573_s1 }
 0x4f5   :  { %s2337_s27 = scalar_lea.vmem %s1574_s1, 128  ;;  %p2342_p3 = scmp.lt.s32.totalorder %s1574_s1, %s1574_s1 }
 0x4f6   :  { %p2338_p2 = scmp.ne.s32.totalorder %s1574_s1, %s2337_s27  ;;  %p2343_p4 = scmp.lt.s32.totalorder %s2337_s27, %s2337_s27 }
 0x4f8   :  { %p2344_p5 = por %p2343_p4, %p2342_p3 }
 0x4fa   :  { %p2345_p6 = pnand %p2344_p5, %p2338_p2 }
 0x579   :  { %v1561_v3 = vpop.xlane.xlu0 %1560 }
 0x57a   :  { %2132 = vlog2.f32 %v1561_v3 }
 0x587   :  { %v2133_v38 = vpop.eup %2132 }
 0x588   :  { %v1563_v40 = vmul.f32 0.6931472, %v2133_v38 }
 0x58a   :  { %v1564_v45 = vadd.f32 %v1563_v40, %v1556_v32 }
 0x58c   :  { %v1565_v49 = vsub.f32 %v1552_v19, %v1564_v45 }
 0x58e   :  { %1566 = vst [vmem:[#allocation11] sm:$0xff] %v1565_v49 }
 0x58f   :  { %2348 = shalt.err (!%p2345_p6)
}
 0x590   :  { %1576 = dma.vmem_to_hbm [thread:$0]  %s1574_s1, 128, %s3194_s9, [#allocation4]  }
 0x591   :  { %2363 = dma.done.wait [#allocation4], 128  }
 0x592   :  { %2364 = vsyncadd [#allocation4], 4294967168 }
 0x593   :  { %2365 = dma.done.wait [#allocation13], 128  }
 0x594   :  { %2366 = vsyncadd [#allocation13], 4294967168 }
 0x595   :  { %1593 = vsyncpa [#allocation3], 1 }
 0x596   :  { %1594 = vsyncpa [#allocation6], 1 }
 0x597   :  { %1595 = vsyncpa [#allocation9], 1 }
 0x598   :  { %1596 = vsyncpa [#allocation4], 1 }
 0x599   :  { %1597 = vsyncpa [#allocation13], 1 }

</bundles_post_ra>
